<compile_context>
chip_gen: v6e
topology: v6e:2x2x1
jax: 0.10.0
libtpu: 0.0.40
codegen_flags: <defaults>
</compile_context>

<pallas_src>
import functools

import jax
import jax.numpy as jnp
from jax import lax
from jax.experimental import pallas as pl
from jax.experimental.pallas import tpu as pltpu

EPS = 1e-6        # epsilon added to the vector norm (module constant)
BN_EPS = 1e-5     # nn.BatchNorm1d default eps
_F32 = jnp.float32

# Set True to lower the two per-element reciprocals onto the EUP (vrcp) slot as
# suggested by the perf review (frees VALU slots); left False here so the
# self-test can hold a tight tolerance vs the pure-JAX reference.
_APPROX_RECIP = False

# Tiles are a few hundred KiB, so 32 MiB is plenty and is legal on v5e (128 MiB
# physical), v6e (128 MiB) and v7x (64 MiB).
_VMEM_LIMIT_BYTES = 32 * 1024 * 1024


def _cparams(semantics):
    return pltpu.CompilerParams(dimension_semantics=semantics,
                                vmem_limit_bytes=_VMEM_LIMIT_BYTES)


def _cost(flops, transcendentals, bytes_accessed):
    return pl.CostEstimate(flops=int(flops), transcendentals=int(transcendentals),
                           bytes_accessed=int(bytes_accessed))


# ---------------------------------------------------------------------------
# In-kernel shared math (operates on lists of three [C, T] component planes).
# ---------------------------------------------------------------------------
def _vn_norm(p):
    # Unrolled 3-vector reduction: pure VALU, no cross-lane work.
    nsq = p[0] * p[0] + p[1] * p[1] + p[2] * p[2]
    return jnp.sqrt(nsq) + EPS


def _vn_bn_leaky(p, d, scale, bias, negative_slope):
    """Folded BatchNorm + vector-neuron LeakyReLU on component planes."""
    norm = _vn_norm(p)                                     # [C, T]
    inv_norm = pl.reciprocal(norm, approx=_APPROX_RECIP)
    s = scale + bias * inv_norm                            # == norm_bn / norm
    p = [pj * s for pj in p]                               # post-BN features
    dotp = p[0] * d[0] + p[1] * d[1] + p[2] * d[2]
    dsq = d[0] * d[0] + d[1] * d[1] + d[2] * d[2]
    inv_dsq = pl.reciprocal(dsq + EPS, approx=_APPROX_RECIP)
    # x_out = p - (1 - slope) * 1[dotp < 0] * (dotp / (|d|^2 + eps)) * d
    coeff = (1.0 - negative_slope) * jnp.where(dotp < 0, dotp * inv_dsq, 0.0)
    return [p[j] - coeff * d[j] for j in range(3)]


# ---------------------------------------------------------------------------
# Kernels
# ---------------------------------------------------------------------------
def _stats1_kernel(x_ref, wfs_ref, sum_ref, sumsq_ref):
    # x_ref: [1, 3*Cin, T] (flat native layout); wfs_ref: [3, C1, 3*Cin]
    # sum/sumsq: [C1, 1] accumulators, resident across the entire grid.
    @pl.when((pl.program_id(0) == 0) & (pl.program_id(1) == 0))
    def _init():
        sum_ref[...] = jnp.zeros_like(sum_ref)
        sumsq_ref[...] = jnp.zeros_like(sumsq_ref)

    xb = x_ref[0].astype(_F32)
    p = [jnp.dot(wfs_ref[j], xb, preferred_element_type=_F32) for j in range(3)]
    norm = _vn_norm(p)
    sum_ref[...] += jnp.sum(norm, axis=1, keepdims=True)
    sumsq_ref[...] += jnp.sum(norm * norm, axis=1, keepdims=True)


def _apply1_kernel(x_ref, wfs_ref, wds_ref, sc_ref, bs_ref, z_ref, *, negative_slope):
    # Layer-1 VNLinearLeakyReLU; writes z1 in component-major layout [1, 3, C1, T].
    xb = x_ref[0].astype(_F32)
    p = [jnp.dot(wfs_ref[j], xb, preferred_element_type=_F32) for j in range(3)]
    d = [jnp.dot(wds_ref[j], xb, preferred_element_type=_F32) for j in range(3)]
    out = _vn_bn_leaky(p, d, sc_ref[...], bs_ref[...], negative_slope)
    for j in range(3):
        z_ref[0, j] = out[j].astype(z_ref.dtype)           # full-plane, lane-dense store


def _stats2_kernel(z_ref, wf_ref, sum_ref, sumsq_ref):
    # z_ref: [1, 3, C1, T] component planes; wf_ref: [C2, C1].
    @pl.when((pl.program_id(0) == 0) & (pl.program_id(1) == 0))
    def _init():
        sum_ref[...] = jnp.zeros_like(sum_ref)
        sumsq_ref[...] = jnp.zeros_like(sumsq_ref)

    wf = wf_ref[...]
    p = [jnp.dot(wf, z_ref[0, j].astype(_F32), preferred_element_type=_F32)
         for j in range(3)]
    norm = _vn_norm(p)
    sum_ref[...] += jnp.sum(norm, axis=1, keepdims=True)
    sumsq_ref[...] += jnp.sum(norm * norm, axis=1, keepdims=True)


def _final_kernel(z_ref, x_ref, wf_ref, wd_ref, sc_ref, bs_ref, w3_ref,
                  sel_ref, selt_ref, xstd_ref, z0_ref, *, negative_slope):
    # Fused: layer-2 VNLinearLeakyReLU + vn_lin + frame transpose + x_std einsum.
    # z_ref: [1, 3, C1, T]; x_ref: [1, 3*Cin, T]
    # sel_ref: [3, Cin, 3*Cin] stride-3 component selectors; selt_ref: transposes.
    wf = wf_ref[...]
    wd = wd_ref[...]
    zin = [z_ref[0, j].astype(_F32) for j in range(3)]
    p = [jnp.dot(wf, zin[j], preferred_element_type=_F32) for j in range(3)]
    d = [jnp.dot(wd, zin[j], preferred_element_type=_F32) for j in range(3)]
    z2 = _vn_bn_leaky(p, d, sc_ref[...], bs_ref[...], negative_slope)   # 3 x [C2, T]

    # vn_lin (C2 -> 3) per component; z3[j][k, n] == z0[b, j, k, n].
    w3 = w3_ref[...]
    z3 = [jnp.dot(w3, z2[j], preferred_element_type=_F32) for j in range(3)]
    for j in range(3):
        z0_ref[0, j] = z3[j].astype(z0_ref.dtype)

    # x_std[b, i, k, n] = sum_j x[b, i, j, n] * z0[b, j, k, n]
    # Component planes of x are extracted on the MXU (no strided slices), then
    # results are re-interleaved back into the native row order 3*i + k.
    xb = x_ref[0].astype(_F32)
    xcomp = [jnp.dot(sel_ref[j], xb, preferred_element_type=_F32) for j in range(3)]
    out = None
    for k in range(3):
        acc = (xcomp[0] * z3[0][k:k + 1, :]
               + xcomp[1] * z3[1][k:k + 1, :]
               + xcomp[2] * z3[2][k:k + 1, :])                          # [Cin, T]
        term = jnp.dot(selt_ref[k], acc, preferred_element_type=_F32)   # [3*Cin, T]
        out = term if out is None else out + term
    xstd_ref[0] = out.astype(xstd_ref.dtype)


# ---------------------------------------------------------------------------
# Tiny wrapper-side structured weights / BN folding (one-time, negligible).
# ---------------------------------------------------------------------------
def _stride3_weights(w):
    """[Co, Ci] -> [3, Co, 3*Ci] with out[j, :, 3*i + j] = w[:, i], so that
    dot(out[j], x_flat) == W @ x[:, :, j, :] directly on the flat native layout."""
    co, ci = w.shape
    out = jnp.zeros((3, co, 3 * ci), w.dtype)
    for j in range(3):
        out = out.at[j, :, j::3].set(w)
    return out


def _component_selectors(ci, dtype):
    """sel[j] @ x_flat extracts vector component j ([Ci, T]); the transposes
    scatter a [Ci, T] plane back into rows 3*i + j of the flat layout."""
    eye = jnp.eye(ci, dtype=dtype)
    sel = jnp.zeros((3, ci, 3 * ci), dtype)
    for j in range(3):
        sel = sel.at[j, :, j::3].set(eye)
    return sel, jnp.transpose(sel, (0, 2, 1))


def _fold_bn(total, total_sq, count, gamma, beta):
    """Fold training-mode BatchNorm1d stats + affine: norm_bn = norm*scale + bias."""
    mean = total / count
    var = jnp.maximum(total_sq / count - mean * mean, 0.0)      # biased variance
    inv_std = lax.rsqrt(var + BN_EPS)
    scale = gamma.astype(_F32)[:, None] * inv_std
    bias = beta.astype(_F32)[:, None] - mean * scale
    return scale, bias


# ---------------------------------------------------------------------------
# pallas_call wrappers
# ---------------------------------------------------------------------------
def _bn1_stats(x_flat, wf_s, tile_n):
    b, c3, n = x_flat.shape
    c1 = wf_s.shape[1]
    grid = (b, n // tile_n)
    return pl.pallas_call(
        _stats1_kernel,
        grid=grid,
        in_specs=[
            pl.BlockSpec((1, c3, tile_n), lambda i, j: (i, 0, j)),
            pl.BlockSpec(wf_s.shape, lambda i, j: (0, 0, 0)),       # resident
        ],
        out_specs=(
            pl.BlockSpec((c1, 1), lambda i, j: (0, 0)),             # accumulator
            pl.BlockSpec((c1, 1), lambda i, j: (0, 0)),
        ),
        out_shape=(
            jax.ShapeDtypeStruct((c1, 1), _F32),
            jax.ShapeDtypeStruct((c1, 1), _F32),
        ),
        compiler_params=_cparams(("arbitrary", "arbitrary")),       # global reduction
        cost_estimate=_cost(flops=8 * c1 * c3 * b * n,
                            transcendentals=c1 * b * n,
                            bytes_accessed=x_flat.size * x_flat.dtype.itemsize),
    )(x_flat, wf_s)


def _apply1(x_flat, wf_s, wd_s, scale, bias, negative_slope, tile_n):
    b, c3, n = x_flat.shape
    c1 = wf_s.shape[1]
    grid = (b, n // tile_n)
    kern = functools.partial(_apply1_kernel, negative_slope=negative_slope)
    z1_bytes = b * 3 * c1 * n * x_flat.dtype.itemsize
    return pl.pallas_call(
        kern,
        grid=grid,
        in_specs=[
            pl.BlockSpec((1, c3, tile_n), lambda i, j: (i, 0, j)),
            pl.BlockSpec(wf_s.shape, lambda i, j: (0, 0, 0)),
            pl.BlockSpec(wd_s.shape, lambda i, j: (0, 0, 0)),
            pl.BlockSpec(scale.shape, lambda i, j: (0, 0)),
            pl.BlockSpec(bias.shape, lambda i, j: (0, 0)),
        ],
        out_specs=pl.BlockSpec((1, 3, c1, tile_n), lambda i, j: (i, 0, 0, j)),
        out_shape=jax.ShapeDtypeStruct((b, 3, c1, n), x_flat.dtype),
        compiler_params=_cparams(("parallel", "parallel")),         # megacore on v7x
        cost_estimate=_cost(flops=(12 * c1 * c3 + 30 * c1) * b * n,
                            transcendentals=3 * c1 * b * n,
                            bytes_accessed=x_flat.size * x_flat.dtype.itemsize
                            + z1_bytes),
    )(x_flat, wf_s, wd_s, scale, bias)


def _bn2_stats(z1, w_feat, tile_n):
    b, _, c1, n = z1.shape
    c2 = w_feat.shape[0]
    grid = (b, n // tile_n)
    return pl.pallas_call(
        _stats2_kernel,
        grid=grid,
        in_specs=[
            pl.BlockSpec((1, 3, c1, tile_n), lambda i, j: (i, 0, 0, j)),
            pl.BlockSpec(w_feat.shape, lambda i, j: (0, 0)),
        ],
        out_specs=(
            pl.BlockSpec((c2, 1), lambda i, j: (0, 0)),
            pl.BlockSpec((c2, 1), lambda i, j: (0, 0)),
        ),
        out_shape=(
            jax.ShapeDtypeStruct((c2, 1), _F32),
            jax.ShapeDtypeStruct((c2, 1), _F32),
        ),
        compiler_params=_cparams(("arbitrary", "arbitrary")),
        cost_estimate=_cost(flops=8 * c2 * c1 * b * n,
                            transcendentals=c2 * b * n,
                            bytes_accessed=z1.size * z1.dtype.itemsize),
    )(z1, w_feat)


def _final(z1, x_flat, w_feat, w_dir, scale, bias, w3, sel, selt,
           negative_slope, tile_n):
    b, _, c1, n = z1.shape
    _, c3, _ = x_flat.shape
    cin = c3 // 3
    c2 = w_feat.shape[0]
    grid = (b, n // tile_n)
    kern = functools.partial(_final_kernel, negative_slope=negative_slope)
    itemsize = x_flat.dtype.itemsize
    flops = (12 * c2 * c1 + 30 * c2 + 12 * c2          # layer-2 VN + vn_lin
             + 12 * cin * c3 + 18 * cin) * b * n       # einsum select / scatter
    return pl.pallas_call(
        kern,
        grid=grid,
        in_specs=[
            pl.BlockSpec((1, 3, c1, tile_n), lambda i, j: (i, 0, 0, j)),
            pl.BlockSpec((1, c3, tile_n), lambda i, j: (i, 0, j)),
            pl.BlockSpec(w_feat.shape, lambda i, j: (0, 0)),
            pl.BlockSpec(w_dir.shape, lambda i, j: (0, 0)),
            pl.BlockSpec(scale.shape, lambda i, j: (0, 0)),
            pl.BlockSpec(bias.shape, lambda i, j: (0, 0)),
            pl.BlockSpec(w3.shape, lambda i, j: (0, 0)),
            pl.BlockSpec(sel.shape, lambda i, j: (0, 0, 0)),
            pl.BlockSpec(selt.shape, lambda i, j: (0, 0, 0)),
        ],
        out_specs=(
            pl.BlockSpec((1, c3, tile_n), lambda i, j: (i, 0, j)),        # x_std (flat)
            pl.BlockSpec((1, 3, 3, tile_n), lambda i, j: (i, 0, 0, j)),   # z0
        ),
        out_shape=(
            jax.ShapeDtypeStruct((b, c3, n), x_flat.dtype),
            jax.ShapeDtypeStruct((b, 3, 3, n), x_flat.dtype),
        ),
        compiler_params=_cparams(("parallel", "parallel")),
        cost_estimate=_cost(flops=flops,
                            transcendentals=3 * c2 * b * n,
                            bytes_accessed=(z1.size + 2 * x_flat.size
                                            + b * 9 * n) * itemsize),
    )(z1, x_flat, w_feat, w_dir, scale, bias, w3, sel, selt)


# ---------------------------------------------------------------------------
# Full VNStdFeature forward
# ---------------------------------------------------------------------------
@functools.partial(jax.jit, static_argnames=("negative_slope", "tile_n"))
def vn_std_feature(x, params, *, negative_slope=0.2, tile_n=512):
    """VNStdFeature forward (dim=4, normalize_frame=False, share_nonlinearity=False).

    x: [B, C, 3, N]. Returns (x_std: [B, C, 3, N], z0: [B, 3, 3, N]).
    """
    b, cin, d3, n = x.shape
    assert d3 == 3, "vector dimension must be 3"
    tile_n = min(tile_n, n)
    assert n % tile_n == 0 and (tile_n % 128 == 0 or tile_n == n), (
        "N must be divisible by the lane tile (a multiple of 128)")
    # TODO(synk): pad N / masked edge tiles for N not a multiple of the lane tile.

    w1f = params["w1_feat"].astype(_F32)
    w1d = params["w1_dir"].astype(_F32)
    w2f = params["w2_feat"].astype(_F32)
    w2d = params["w2_dir"].astype(_F32)
    w3 = params["w3"].astype(_F32)

    # Free reshape of the native [B, C, 3, N] layout (adjacent dims merge; no copy).
    x_flat = x.reshape(b, 3 * cin, n)

    # Tiny one-time structured weights (stride-3 layout folded into the matmuls).
    w1f_s = _stride3_weights(w1f)                 # [3, C1, 3*Cin]
    w1d_s = _stride3_weights(w1d)
    sel, selt = _component_selectors(cin, _F32)   # [3, Cin, 3*Cin], [3, 3*Cin, Cin]

    count = b * n  # BatchNorm1d batch-statistics population per channel

    # Layer 1: global-stats pass -> folded BN -> apply pass (z1 component-major).
    s1, ss1 = _bn1_stats(x_flat, w1f_s, tile_n)
    bn1_scale, bn1_bias = _fold_bn(s1, ss1, count,
                                   params["bn1_gamma"], params["bn1_beta"])
    z1 = _apply1(x_flat, w1f_s, w1d_s, bn1_scale, bn1_bias, negative_slope, tile_n)

    # Layer 2 stats, then fused (layer-2 apply + vn_lin + frame transpose + einsum).
    s2, ss2 = _bn2_stats(z1, w2f, tile_n)
    bn2_scale, bn2_bias = _fold_bn(s2, ss2, count,
                                   params["bn2_gamma"], params["bn2_beta"])
    x_std_flat, z0 = _final(z1, x_flat, w2f, w2d, bn2_scale, bn2_bias, w3,
                            sel, selt, negative_slope, tile_n)
    return x_std_flat.reshape(b, cin, 3, n), z0


# ---------------------------------------------------------------------------
# Pure-JAX reference (mirrors the PyTorch module)
# ---------------------------------------------------------------------------
def _vn_linear_leaky_relu_ref(x, w_feat, w_dir, gamma, beta, negative_slope):
    hp = lax.Precision.HIGHEST
    p = jnp.einsum('oc,bcdn->bodn', w_feat, x, precision=hp)
    norm = jnp.sqrt(jnp.sum(p * p, axis=2)) + EPS                    # [B, Co, N]
    mean = jnp.mean(norm, axis=(0, 2), keepdims=True)
    var = jnp.mean((norm - mean) ** 2, axis=(0, 2), keepdims=True)   # biased
    norm_bn = (norm - mean) / jnp.sqrt(var + BN_EPS)
    norm_bn = norm_bn * gamma[None, :, None] + beta[None, :, None]
    p = p / norm[:, :, None, :] * norm_bn[:, :, None, :]
    d = jnp.einsum('oc,bcdn->bodn', w_dir, x, precision=hp)
    dotp = jnp.sum(p * d, axis=2, keepdims=True)
    dsq = jnp.sum(d * d, axis=2, keepdims=True)
    mask = (dotp >= 0).astype(x.dtype)
    return (negative_slope * p
            + (1 - negative_slope) * (mask * p
                                      + (1 - mask) * (p - dotp / (dsq + EPS) * d)))


def vn_std_feature_ref(x, params, negative_slope=0.2):
    hp = lax.Precision.HIGHEST
    z = _vn_linear_leaky_relu_ref(x, params["w1_feat"], params["w1_dir"],
                                  params["bn1_gamma"], params["bn1_beta"],
                                  negative_slope)
    z = _vn_linear_leaky_relu_ref(z, params["w2_feat"], params["w2_dir"],
                                  params["bn2_gamma"], params["bn2_beta"],
                                  negative_slope)
    z3 = jnp.einsum('kc,bcjn->bkjn', params["w3"], z, precision=hp)
    z0 = jnp.transpose(z3, (0, 2, 1, 3))                              # [B, 3, 3, N]
    x_std = jnp.einsum('bijn,bjkn->bikn', x, z0, precision=hp)
    return x_std, z0


if __name__ == "__main__":
    B, CIN, N = 2, 16, 256            # small: [B, N_feat, 3, N_samples]
    C1, C2 = CIN // 2, CIN // 4

    key = jax.random.PRNGKey(0)
    kx, k1, k2, k3, k4, k5 = jax.random.split(key, 6)

    def linear_init(k, co, ci):       # ~ PyTorch default nn.Linear init scale
        return jax.random.uniform(k, (co, ci), _F32, -1.0, 1.0) / jnp.sqrt(ci)

    x = jax.random.normal(kx, (B, CIN, 3, N), dtype=_F32)
    params = {
        "w1_feat": linear_init(k1, C1, CIN),
        "w1_dir": linear_init(k2, C1, CIN),
        "bn1_gamma": jnp.ones((C1,), _F32),
        "bn1_beta": jnp.zeros((C1,), _F32),
        "w2_feat": linear_init(k3, C2, C1),
        "w2_dir": linear_init(k4, C2, C1),
        "bn2_gamma": jnp.ones((C2,), _F32),
        "bn2_beta": jnp.zeros((C2,), _F32),
        "w3": linear_init(k5, 3, C2),
    }
    # TODO(synk): BatchNorm1d running_mean/running_var side-effect updates (used
    # only in eval mode) are not modeled; training-mode batch statistics are
    # used, which is what determines the module's forward output.

    # tile_n=128 at this small N so the grid / lane tiling and the BN-stats
    # accumulation across multiple tiles is actually exercised (default is 512).
    x_std, z0 = vn_std_feature(x, params, tile_n=128)
    x_std, z0 = jax.block_until_ready((x_std, z0))

    x_std_ref, z0_ref = vn_std_feature_ref(x, params)
    assert x_std.shape == (B, CIN, 3, N) and z0.shape == (B, 3, 3, N)
    assert jnp.allclose(z0, z0_ref, atol=1e-3, rtol=1e-3), "z0 mismatch vs reference"
    assert jnp.allclose(x_std, x_std_ref, atol=1e-3, rtol=1e-3), "x_std mismatch vs reference"
    print("KERNEL_OK")
</pallas_src>

<mosaic_0001>
module attributes {stable_mosaic.version = 11 : i64} {
  func.func @_stats1_kernel(%arg0: i32, %arg1: i32, %arg2: memref<1x48x128xf32, #tpu.memory_space<vmem>>, %arg3: memref<3x8x48xf32, #tpu.memory_space<vmem>>, %arg4: memref<8x1xf32, #tpu.memory_space<vmem>>, %arg5: memref<8x1xf32, #tpu.memory_space<vmem>>) attributes {dimension_semantics = [#tpu.dimension_semantics<arbitrary>, #tpu.dimension_semantics<arbitrary>], iteration_bounds = array<i64: 2, 2>, scalar_prefetch = 0 : i64, scratch_operands = 0 : i64, tpu.core_type = #tpu.core_type<tc>, window_params = [{transform_indices = @transform_0, window_bounds = array<i64: 1, 48, 128>}, {pipeline_mode = #tpu.pipeline_mode<synchronous>, transform_indices = @transform_1, window_bounds = array<i64: 3, 8, 48>}, {pipeline_mode = #tpu.pipeline_mode<synchronous>, transform_indices = @transform_2, window_bounds = array<i64: 8, 1>}, {pipeline_mode = #tpu.pipeline_mode<synchronous>, transform_indices = @transform_3, window_bounds = array<i64: 8, 1>}]} {
    %c0_i32 = arith.constant 0 : i32
    %0 = arith.cmpi eq, %arg0, %c0_i32 : i32
    %c0_i32_0 = arith.constant 0 : i32
    %1 = arith.cmpi eq, %arg1, %c0_i32_0 : i32
    %2 = arith.andi %0, %1 : i1
    %3 = arith.extui %2 : i1 to i32
    %c0_i32_1 = arith.constant 0 : i32
    %4 = arith.cmpi ne, %3, %c0_i32_1 : i32
    scf.if %4 {
      %cst_24 = arith.constant 0.000000e+00 : f32
      %35 = vector.broadcast %cst_24 : f32 to vector<8x1xf32>
      %c0_25 = arith.constant 0 : index
      %c0_26 = arith.constant 0 : index
      %36 = vector.load %arg4[%c0_25, %c0_26] : memref<8x1xf32, #tpu.memory_space<vmem>>, vector<8x1xf32>
      tpu.vector_store %arg4[%c0_25, %c0_26], %35 {strides = array<i32>} : memref<8x1xf32, #tpu.memory_space<vmem>>, vector<8x1xf32>,
      %cst_27 = arith.constant 0.000000e+00 : f32
      %37 = vector.broadcast %cst_27 : f32 to vector<8x1xf32>
      %c0_28 = arith.constant 0 : index
      %c0_29 = arith.constant 0 : index
      %38 = vector.load %arg5[%c0_28, %c0_29] : memref<8x1xf32, #tpu.memory_space<vmem>>, vector<8x1xf32>
      tpu.vector_store %arg5[%c0_28, %c0_29], %37 {strides = array<i32>} : memref<8x1xf32, #tpu.memory_space<vmem>>, vector<8x1xf32>,
    } else {
    }
    %c0 = arith.constant 0 : index
    %c0_2 = arith.constant 0 : index
    %c0_3 = arith.constant 0 : index
    %5 = vector.load %arg2[%c0, %c0_2, %c0_3] : memref<1x48x128xf32, #tpu.memory_space<vmem>>, vector<1x48x128xf32>
    %6 = vector.shape_cast %5 : vector<1x48x128xf32> to vector<48x128xf32>
    %c0_4 = arith.constant 0 : index
    %c0_5 = arith.constant 0 : index
    %c0_6 = arith.constant 0 : index
    %7 = vector.load %arg3[%c0_4, %c0_5, %c0_6] : memref<3x8x48xf32, #tpu.memory_space<vmem>>, vector<1x8x48xf32>
    %8 = vector.shape_cast %7 : vector<1x8x48xf32> to vector<8x48xf32>
    %cst = arith.constant dense<0.000000e+00> : vector<8x128xf32>
    %9 = tpu.matmul %8, %6, %cst {dimension_numbers = #tpu.dot_dimension_numbers<[1], [0], [0], [1], [0, 0, 1, 1], [], []>} : vector<8x48xf32>, vector<48x128xf32>, vector<8x128xf32> -> vector<8x128xf32>
    %c1 = arith.constant 1 : index
    %c0_7 = arith.constant 0 : index
    %c0_8 = arith.constant 0 : index
    %10 = vector.load %arg3[%c1, %c0_7, %c0_8] : memref<3x8x48xf32, #tpu.memory_space<vmem>>, vector<1x8x48xf32>
    %11 = vector.shape_cast %10 : vector<1x8x48xf32> to vector<8x48xf32>
    %cst_9 = arith.constant dense<0.000000e+00> : vector<8x128xf32>
    %12 = tpu.matmul %11, %6, %cst_9 {dimension_numbers = #tpu.dot_dimension_numbers<[1], [0], [0], [1], [0, 0, 1, 1], [], []>} : vector<8x48xf32>, vector<48x128xf32>, vector<8x128xf32> -> vector<8x128xf32>
    %c2 = arith.constant 2 : index
    %c0_10 = arith.constant 0 : index
    %c0_11 = arith.constant 0 : index
    %13 = vector.load %arg3[%c2, %c0_10, %c0_11] : memref<3x8x48xf32, #tpu.memory_space<vmem>>, vector<1x8x48xf32>
    %14 = vector.shape_cast %13 : vector<1x8x48xf32> to vector<8x48xf32>
    %cst_12 = arith.constant dense<0.000000e+00> : vector<8x128xf32>
    %15 = tpu.matmul %14, %6, %cst_12 {dimension_numbers = #tpu.dot_dimension_numbers<[1], [0], [0], [1], [0, 0, 1, 1], [], []>} : vector<8x48xf32>, vector<48x128xf32>, vector<8x128xf32> -> vector<8x128xf32>
    %16 = arith.mulf %9, %9 : vector<8x128xf32>
    %17 = arith.mulf %12, %12 : vector<8x128xf32>
    %18 = arith.addf %16, %17 : vector<8x128xf32>
    %19 = arith.mulf %15, %15 : vector<8x128xf32>
    %20 = arith.addf %18, %19 : vector<8x128xf32>
    %21 = math.sqrt %20 : vector<8x128xf32>
    %cst_13 = arith.constant 9.99999997E-7 : f32
    %22 = vector.broadcast %cst_13 : f32 to vector<8x128xf32>
    %23 = arith.addf %21, %22 : vector<8x128xf32>
    %c0_14 = arith.constant 0 : index
    %c0_15 = arith.constant 0 : index
    %24 = vector.load %arg4[%c0_14, %c0_15] : memref<8x1xf32, #tpu.memory_space<vmem>>, vector<8x1xf32>
    %cst_16 = arith.constant dense<0.000000e+00> : vector<8xf32>
    %25 = vector.multi_reduction <add>, %23, %cst_16 [1] : vector<8x128xf32> to vector<8xf32>
    %26 = vector.shape_cast %25 : vector<8xf32> to vector<8x1xf32>
    %27 = arith.addf %24, %26 : vector<8x1xf32>
    %c0_17 = arith.constant 0 : index
    %c0_18 = arith.constant 0 : index
    %28 = vector.load %arg4[%c0_17, %c0_18] : memref<8x1xf32, #tpu.memory_space<vmem>>, vector<8x1xf32>
    tpu.vector_store %arg4[%c0_17, %c0_18], %27 {strides = array<i32>} : memref<8x1xf32, #tpu.memory_space<vmem>>, vector<8x1xf32>,
    %c0_19 = arith.constant 0 : index
    %c0_20 = arith.constant 0 : index
    %29 = vector.load %arg5[%c0_19, %c0_20] : memref<8x1xf32, #tpu.memory_space<vmem>>, vector<8x1xf32>
    %30 = arith.mulf %23, %23 : vector<8x128xf32>
    %cst_21 = arith.constant dense<0.000000e+00> : vector<8xf32>
    %31 = vector.multi_reduction <add>, %30, %cst_21 [1] : vector<8x128xf32> to vector<8xf32>
    %32 = vector.shape_cast %31 : vector<8xf32> to vector<8x1xf32>
    %33 = arith.addf %29, %32 : vector<8x1xf32>
    %c0_22 = arith.constant 0 : index
    %c0_23 = arith.constant 0 : index
    %34 = vector.load %arg5[%c0_22, %c0_23] : memref<8x1xf32, #tpu.memory_space<vmem>>, vector<8x1xf32>
    tpu.vector_store %arg5[%c0_22, %c0_23], %33 {strides = array<i32>} : memref<8x1xf32, #tpu.memory_space<vmem>>, vector<8x1xf32>,
    return
  }
  func.func @transform_0(%arg0: i32, %arg1: i32) -> (i32, i32, i32) {
    %c0_i32 = arith.constant 0 : i32
    %c0_i32_0 = arith.constant 0 : i32
    return %arg0, %c0_i32, %arg1 : i32, i32, i32
  }
  func.func @transform_1(%arg0: i32, %arg1: i32) -> (i32, i32, i32) {
    %c0_i32 = arith.constant 0 : i32
    %c0_i32_0 = arith.constant 0 : i32
    %c0_i32_1 = arith.constant 0 : i32
    %c0_i32_2 = arith.constant 0 : i32
    return %c0_i32, %c0_i32_0, %c0_i32_1 : i32, i32, i32
  }
  func.func @transform_2(%arg0: i32, %arg1: i32) -> (i32, i32) {
    %c0_i32 = arith.constant 0 : i32
    %c0_i32_0 = arith.constant 0 : i32
    %c0_i32_1 = arith.constant 0 : i32
    return %c0_i32, %c0_i32_0 : i32, i32
  }
  func.func @transform_3(%arg0: i32, %arg1: i32) -> (i32, i32) {
    %c0_i32 = arith.constant 0 : i32
    %c0_i32_0 = arith.constant 0 : i32
    %c0_i32_1 = arith.constant 0 : i32
    return %c0_i32, %c0_i32_0 : i32, i32
  }
}

module attributes {stable_mosaic.version = 11 : i64} {
  func.func @_apply1_kernel(%arg0: i32, %arg1: i32, %arg2: memref<1x48x128xf32, #tpu.memory_space<vmem>>, %arg3: memref<3x8x48xf32, #tpu.memory_space<vmem>>, %arg4: memref<3x8x48xf32, #tpu.memory_space<vmem>>, %arg5: memref<8x1xf32, #tpu.memory_space<vmem>>, %arg6: memref<8x1xf32, #tpu.memory_space<vmem>>, %arg7: memref<1x3x8x128xf32, #tpu.memory_space<vmem>>) attributes {dimension_semantics = [#tpu.dimension_semantics<parallel>, #tpu.dimension_semantics<parallel>], iteration_bounds = array<i64: 2, 2>, scalar_prefetch = 0 : i64, scratch_operands = 0 : i64, tpu.core_type = #tpu.core_type<tc>, window_params = [{transform_indices = @transform_0, window_bounds = array<i64: 1, 48, 128>}, {pipeline_mode = #tpu.pipeline_mode<synchronous>, transform_indices = @transform_1, window_bounds = array<i64: 3, 8, 48>}, {pipeline_mode = #tpu.pipeline_mode<synchronous>, transform_indices = @transform_2, window_bounds = array<i64: 3, 8, 48>}, {pipeline_mode = #tpu.pipeline_mode<synchronous>, transform_indices = @transform_3, window_bounds = array<i64: 8, 1>}, {pipeline_mode = #tpu.pipeline_mode<synchronous>, transform_indices = @transform_4, window_bounds = array<i64: 8, 1>}, {transform_indices = @transform_5, window_bounds = array<i64: 1, 3, 8, 128>}]} {
    %c0 = arith.constant 0 : index
    %c0_0 = arith.constant 0 : index
    %c0_1 = arith.constant 0 : index
    %0 = vector.load %arg2[%c0, %c0_0, %c0_1] : memref<1x48x128xf32, #tpu.memory_space<vmem>>, vector<1x48x128xf32>
    %1 = vector.shape_cast %0 : vector<1x48x128xf32> to vector<48x128xf32>
    %c0_2 = arith.constant 0 : index
    %c0_3 = arith.constant 0 : index
    %c0_4 = arith.constant 0 : index
    %2 = vector.load %arg3[%c0_2, %c0_3, %c0_4] : memref<3x8x48xf32, #tpu.memory_space<vmem>>, vector<1x8x48xf32>
    %3 = vector.shape_cast %2 : vector<1x8x48xf32> to vector<8x48xf32>
    %cst = arith.constant dense<0.000000e+00> : vector<8x128xf32>
    %4 = tpu.matmul %3, %1, %cst {dimension_numbers = #tpu.dot_dimension_numbers<[1], [0], [0], [1], [0, 0, 1, 1], [], []>} : vector<8x48xf32>, vector<48x128xf32>, vector<8x128xf32> -> vector<8x128xf32>
    %c1 = arith.constant 1 : index
    %c0_5 = arith.constant 0 : index
    %c0_6 = arith.constant 0 : index
    %5 = vector.load %arg3[%c1, %c0_5, %c0_6] : memref<3x8x48xf32, #tpu.memory_space<vmem>>, vector<1x8x48xf32>
    %6 = vector.shape_cast %5 : vector<1x8x48xf32> to vector<8x48xf32>
    %cst_7 = arith.constant dense<0.000000e+00> : vector<8x128xf32>
    %7 = tpu.matmul %6, %1, %cst_7 {dimension_numbers = #tpu.dot_dimension_numbers<[1], [0], [0], [1], [0, 0, 1, 1], [], []>} : vector<8x48xf32>, vector<48x128xf32>, vector<8x128xf32> -> vector<8x128xf32>
    %c2 = arith.constant 2 : index
    %c0_8 = arith.constant 0 : index
    %c0_9 = arith.constant 0 : index
    %8 = vector.load %arg3[%c2, %c0_8, %c0_9] : memref<3x8x48xf32, #tpu.memory_space<vmem>>, vector<1x8x48xf32>
    %9 = vector.shape_cast %8 : vector<1x8x48xf32> to vector<8x48xf32>
    %cst_10 = arith.constant dense<0.000000e+00> : vector<8x128xf32>
    %10 = tpu.matmul %9, %1, %cst_10 {dimension_numbers = #tpu.dot_dimension_numbers<[1], [0], [0], [1], [0, 0, 1, 1], [], []>} : vector<8x48xf32>, vector<48x128xf32>, vector<8x128xf32> -> vector<8x128xf32>
    %c0_11 = arith.constant 0 : index
    %c0_12 = arith.constant 0 : index
    %c0_13 = arith.constant 0 : index
    %11 = vector.load %arg4[%c0_11, %c0_12, %c0_13] : memref<3x8x48xf32, #tpu.memory_space<vmem>>, vector<1x8x48xf32>
    %12 = vector.shape_cast %11 : vector<1x8x48xf32> to vector<8x48xf32>
    %cst_14 = arith.constant dense<0.000000e+00> : vector<8x128xf32>
    %13 = tpu.matmul %12, %1, %cst_14 {dimension_numbers = #tpu.dot_dimension_numbers<[1], [0], [0], [1], [0, 0, 1, 1], [], []>} : vector<8x48xf32>, vector<48x128xf32>, vector<8x128xf32> -> vector<8x128xf32>
    %c1_15 = arith.constant 1 : index
    %c0_16 = arith.constant 0 : index
    %c0_17 = arith.constant 0 : index
    %14 = vector.load %arg4[%c1_15, %c0_16, %c0_17] : memref<3x8x48xf32, #tpu.memory_space<vmem>>, vector<1x8x48xf32>
    %15 = vector.shape_cast %14 : vector<1x8x48xf32> to vector<8x48xf32>
    %cst_18 = arith.constant dense<0.000000e+00> : vector<8x128xf32>
    %16 = tpu.matmul %15, %1, %cst_18 {dimension_numbers = #tpu.dot_dimension_numbers<[1], [0], [0], [1], [0, 0, 1, 1], [], []>} : vector<8x48xf32>, vector<48x128xf32>, vector<8x128xf32> -> vector<8x128xf32>
    %c2_19 = arith.constant 2 : index
    %c0_20 = arith.constant 0 : index
    %c0_21 = arith.constant 0 : index
    %17 = vector.load %arg4[%c2_19, %c0_20, %c0_21] : memref<3x8x48xf32, #tpu.memory_space<vmem>>, vector<1x8x48xf32>
    %18 = vector.shape_cast %17 : vector<1x8x48xf32> to vector<8x48xf32>
    %cst_22 = arith.constant dense<0.000000e+00> : vector<8x128xf32>
    %19 = tpu.matmul %18, %1, %cst_22 {dimension_numbers = #tpu.dot_dimension_numbers<[1], [0], [0], [1], [0, 0, 1, 1], [], []>} : vector<8x48xf32>, vector<48x128xf32>, vector<8x128xf32> -> vector<8x128xf32>
    %c0_23 = arith.constant 0 : index
    %c0_24 = arith.constant 0 : index
    %20 = vector.load %arg5[%c0_23, %c0_24] : memref<8x1xf32, #tpu.memory_space<vmem>>, vector<8x1xf32>
    %c0_25 = arith.constant 0 : index
    %c0_26 = arith.constant 0 : index
    %21 = vector.load %arg6[%c0_25, %c0_26] : memref<8x1xf32, #tpu.memory_space<vmem>>, vector<8x1xf32>
    %22 = arith.mulf %4, %4 : vector<8x128xf32>
    %23 = arith.mulf %7, %7 : vector<8x128xf32>
    %24 = arith.addf %22, %23 : vector<8x128xf32>
    %25 = arith.mulf %10, %10 : vector<8x128xf32>
    %26 = arith.addf %24, %25 : vector<8x128xf32>
    %27 = math.sqrt %26 : vector<8x128xf32>
    %cst_27 = arith.constant 9.99999997E-7 : f32
    %28 = vector.broadcast %cst_27 : f32 to vector<8x128xf32>
    %29 = arith.addf %27, %28 : vector<8x128xf32>
    %30 = tpu.reciprocal %29 : vector<8x128xf32> -> vector<8x128xf32>
    %31 = vector.broadcast %21 : vector<8x1xf32> to vector<8x128xf32>
    %32 = arith.mulf %31, %30 : vector<8x128xf32>
    %33 = vector.broadcast %20 : vector<8x1xf32> to vector<8x128xf32>
    %34 = arith.addf %33, %32 : vector<8x128xf32>
    %35 = arith.mulf %4, %34 : vector<8x128xf32>
    %36 = arith.mulf %7, %34 : vector<8x128xf32>
    %37 = arith.mulf %10, %34 : vector<8x128xf32>
    %38 = arith.mulf %35, %13 : vector<8x128xf32>
    %39 = arith.mulf %36, %16 : vector<8x128xf32>
    %40 = arith.addf %38, %39 : vector<8x128xf32>
    %41 = arith.mulf %37, %19 : vector<8x128xf32>
    %42 = arith.addf %40, %41 : vector<8x128xf32>
    %43 = arith.mulf %13, %13 : vector<8x128xf32>
    %44 = arith.mulf %16, %16 : vector<8x128xf32>
    %45 = arith.addf %43, %44 : vector<8x128xf32>
    %46 = arith.mulf %19, %19 : vector<8x128xf32>
    %47 = arith.addf %45, %46 : vector<8x128xf32>
    %cst_28 = arith.constant 9.99999997E-7 : f32
    %48 = vector.broadcast %cst_28 : f32 to vector<8x128xf32>
    %49 = arith.addf %47, %48 : vector<8x128xf32>
    %50 = tpu.reciprocal %49 : vector<8x128xf32> -> vector<8x128xf32>
    %cst_29 = arith.constant 0.000000e+00 : f32
    %51 = vector.broadcast %cst_29 : f32 to vector<8x128xf32>
    %52 = arith.cmpf olt, %42, %51 : vector<8x128xf32>
    %53 = arith.mulf %42, %50 : vector<8x128xf32>
    %cst_30 = arith.constant 0.000000e+00 : f32
    %54 = vector.broadcast %cst_30 : f32 to vector<8x128xf32>
    %55 = arith.select %52, %53, %54 : vector<8x128xi1>, vector<8x128xf32>
    %cst_31 = arith.constant 8.000000e-01 : f32
    %56 = vector.broadcast %cst_31 : f32 to vector<8x128xf32>
    %57 = arith.mulf %56, %55 : vector<8x128xf32>
    %58 = arith.mulf %57, %13 : vector<8x128xf32>
    %59 = arith.subf %35, %58 : vector<8x128xf32>
    %60 = arith.mulf %57, %16 : vector<8x128xf32>
    %61 = arith.subf %36, %60 : vector<8x128xf32>
    %62 = arith.mulf %57, %19 : vector<8x128xf32>
    %63 = arith.subf %37, %62 : vector<8x128xf32>
    %c0_32 = arith.constant 0 : index
    %c0_33 = arith.constant 0 : index
    %c0_34 = arith.constant 0 : index
    %c0_35 = arith.constant 0 : index
    %64 = vector.load %arg7[%c0_32, %c0_33, %c0_34, %c0_35] : memref<1x3x8x128xf32, #tpu.memory_space<vmem>>, vector<1x1x8x128xf32>
    %65 = vector.shape_cast %64 : vector<1x1x8x128xf32> to vector<8x128xf32>
    %66 = vector.shape_cast %59 : vector<8x128xf32> to vector<1x1x8x128xf32>
    tpu.vector_store %arg7[%c0_32, %c0_33, %c0_34, %c0_35], %66 {strides = array<i32>} : memref<1x3x8x128xf32, #tpu.memory_space<vmem>>, vector<1x1x8x128xf32>,
    %c0_36 = arith.constant 0 : index
    %c1_37 = arith.constant 1 : index
    %c0_38 = arith.constant 0 : index
    %c0_39 = arith.constant 0 : index
    %67 = vector.load %arg7[%c0_36, %c1_37, %c0_38, %c0_39] : memref<1x3x8x128xf32, #tpu.memory_space<vmem>>, vector<1x1x8x128xf32>
    %68 = vector.shape_cast %67 : vector<1x1x8x128xf32> to vector<8x128xf32>
    %69 = vector.shape_cast %61 : vector<8x128xf32> to vector<1x1x8x128xf32>
    tpu.vector_store %arg7[%c0_36, %c1_37, %c0_38, %c0_39], %69 {strides = array<i32>} : memref<1x3x8x128xf32, #tpu.memory_space<vmem>>, vector<1x1x8x128xf32>,
    %c0_40 = arith.constant 0 : index
    %c2_41 = arith.constant 2 : index
    %c0_42 = arith.constant 0 : index
    %c0_43 = arith.constant 0 : index
    %70 = vector.load %arg7[%c0_40, %c2_41, %c0_42, %c0_43] : memref<1x3x8x128xf32, #tpu.memory_space<vmem>>, vector<1x1x8x128xf32>
    %71 = vector.shape_cast %70 : vector<1x1x8x128xf32> to vector<8x128xf32>
    %72 = vector.shape_cast %63 : vector<8x128xf32> to vector<1x1x8x128xf32>
    tpu.vector_store %arg7[%c0_40, %c2_41, %c0_42, %c0_43], %72 {strides = array<i32>} : memref<1x3x8x128xf32, #tpu.memory_space<vmem>>, vector<1x1x8x128xf32>,
    return
  }
  func.func @transform_0(%arg0: i32, %arg1: i32) -> (i32, i32, i32) {
    %c0_i32 = arith.constant 0 : i32
    %c0_i32_0 = arith.constant 0 : i32
    return %arg0, %c0_i32, %arg1 : i32, i32, i32
  }
  func.func @transform_1(%arg0: i32, %arg1: i32) -> (i32, i32, i32) {
    %c0_i32 = arith.constant 0 : i32
    %c0_i32_0 = arith.constant 0 : i32
    %c0_i32_1 = arith.constant 0 : i32
    %c0_i32_2 = arith.constant 0 : i32
    return %c0_i32, %c0_i32_0, %c0_i32_1 : i32, i32, i32
  }
  func.func @transform_2(%arg0: i32, %arg1: i32) -> (i32, i32, i32) {
    %c0_i32 = arith.constant 0 : i32
    %c0_i32_0 = arith.constant 0 : i32
    %c0_i32_1 = arith.constant 0 : i32
    %c0_i32_2 = arith.constant 0 : i32
    return %c0_i32, %c0_i32_0, %c0_i32_1 : i32, i32, i32
  }
  func.func @transform_3(%arg0: i32, %arg1: i32) -> (i32, i32) {
    %c0_i32 = arith.constant 0 : i32
    %c0_i32_0 = arith.constant 0 : i32
    %c0_i32_1 = arith.constant 0 : i32
    return %c0_i32, %c0_i32_0 : i32, i32
  }
  func.func @transform_4(%arg0: i32, %arg1: i32) -> (i32, i32) {
    %c0_i32 = arith.constant 0 : i32
    %c0_i32_0 = arith.constant 0 : i32
    %c0_i32_1 = arith.constant 0 : i32
    return %c0_i32, %c0_i32_0 : i32, i32
  }
  func.func @transform_5(%arg0: i32, %arg1: i32) -> (i32, i32, i32, i32) {
    %c0_i32 = arith.constant 0 : i32
    %c0_i32_0 = arith.constant 0 : i32
    %c0_i32_1 = arith.constant 0 : i32
    return %arg0, %c0_i32, %c0_i32_0, %arg1 : i32, i32, i32, i32
  }
}

module attributes {stable_mosaic.version = 11 : i64} {
  func.func @_stats2_kernel(%arg0: i32, %arg1: i32, %arg2: memref<1x3x8x128xf32, #tpu.memory_space<vmem>>, %arg3: memref<4x8xf32, #tpu.memory_space<vmem>>, %arg4: memref<4x1xf32, #tpu.memory_space<vmem>>, %arg5: memref<4x1xf32, #tpu.memory_space<vmem>>) attributes {dimension_semantics = [#tpu.dimension_semantics<arbitrary>, #tpu.dimension_semantics<arbitrary>], iteration_bounds = array<i64: 2, 2>, scalar_prefetch = 0 : i64, scratch_operands = 0 : i64, tpu.core_type = #tpu.core_type<tc>, window_params = [{transform_indices = @transform_0, window_bounds = array<i64: 1, 3, 8, 128>}, {pipeline_mode = #tpu.pipeline_mode<synchronous>, transform_indices = @transform_1, window_bounds = array<i64: 4, 8>}, {pipeline_mode = #tpu.pipeline_mode<synchronous>, transform_indices = @transform_2, window_bounds = array<i64: 4, 1>}, {pipeline_mode = #tpu.pipeline_mode<synchronous>, transform_indices = @transform_3, window_bounds = array<i64: 4, 1>}]} {
    %c0_i32 = arith.constant 0 : i32
    %0 = arith.cmpi eq, %arg0, %c0_i32 : i32
    %c0_i32_0 = arith.constant 0 : i32
    %1 = arith.cmpi eq, %arg1, %c0_i32_0 : i32
    %2 = arith.andi %0, %1 : i1
    %3 = arith.extui %2 : i1 to i32
    %c0_i32_1 = arith.constant 0 : i32
    %4 = arith.cmpi ne, %3, %c0_i32_1 : i32
    scf.if %4 {
      %cst_26 = arith.constant 0.000000e+00 : f32
      %34 = vector.broadcast %cst_26 : f32 to vector<4x1xf32>
      %c0_27 = arith.constant 0 : index
      %c0_28 = arith.constant 0 : index
      %35 = vector.load %arg4[%c0_27, %c0_28] : memref<4x1xf32, #tpu.memory_space<vmem>>, vector<4x1xf32>
      tpu.vector_store %arg4[%c0_27, %c0_28], %34 {strides = array<i32>} : memref<4x1xf32, #tpu.memory_space<vmem>>, vector<4x1xf32>,
      %cst_29 = arith.constant 0.000000e+00 : f32
      %36 = vector.broadcast %cst_29 : f32 to vector<4x1xf32>
      %c0_30 = arith.constant 0 : index
      %c0_31 = arith.constant 0 : index
      %37 = vector.load %arg5[%c0_30, %c0_31] : memref<4x1xf32, #tpu.memory_space<vmem>>, vector<4x1xf32>
      tpu.vector_store %arg5[%c0_30, %c0_31], %36 {strides = array<i32>} : memref<4x1xf32, #tpu.memory_space<vmem>>, vector<4x1xf32>,
    } else {
    }
    %c0 = arith.constant 0 : index
    %c0_2 = arith.constant 0 : index
    %5 = vector.load %arg3[%c0, %c0_2] : memref<4x8xf32, #tpu.memory_space<vmem>>, vector<4x8xf32>
    %c0_3 = arith.constant 0 : index
    %c0_4 = arith.constant 0 : index
    %c0_5 = arith.constant 0 : index
    %c0_6 = arith.constant 0 : index
    %6 = vector.load %arg2[%c0_3, %c0_4, %c0_5, %c0_6] : memref<1x3x8x128xf32, #tpu.memory_space<vmem>>, vector<1x1x8x128xf32>
    %7 = vector.shape_cast %6 : vector<1x1x8x128xf32> to vector<8x128xf32>
    %cst = arith.constant dense<0.000000e+00> : vector<4x128xf32>
    %8 = tpu.matmul %5, %7, %cst {dimension_numbers = #tpu.dot_dimension_numbers<[1], [0], [0], [1], [0, 0, 1, 1], [], []>} : vector<4x8xf32>, vector<8x128xf32>, vector<4x128xf32> -> vector<4x128xf32>
    %c0_7 = arith.constant 0 : index
    %c1 = arith.constant 1 : index
    %c0_8 = arith.constant 0 : index
    %c0_9 = arith.constant 0 : index
    %9 = vector.load %arg2[%c0_7, %c1, %c0_8, %c0_9] : memref<1x3x8x128xf32, #tpu.memory_space<vmem>>, vector<1x1x8x128xf32>
    %10 = vector.shape_cast %9 : vector<1x1x8x128xf32> to vector<8x128xf32>
    %cst_10 = arith.constant dense<0.000000e+00> : vector<4x128xf32>
    %11 = tpu.matmul %5, %10, %cst_10 {dimension_numbers = #tpu.dot_dimension_numbers<[1], [0], [0], [1], [0, 0, 1, 1], [], []>} : vector<4x8xf32>, vector<8x128xf32>, vector<4x128xf32> -> vector<4x128xf32>
    %c0_11 = arith.constant 0 : index
    %c2 = arith.constant 2 : index
    %c0_12 = arith.constant 0 : index
    %c0_13 = arith.constant 0 : index
    %12 = vector.load %arg2[%c0_11, %c2, %c0_12, %c0_13] : memref<1x3x8x128xf32, #tpu.memory_space<vmem>>, vector<1x1x8x128xf32>
    %13 = vector.shape_cast %12 : vector<1x1x8x128xf32> to vector<8x128xf32>
    %cst_14 = arith.constant dense<0.000000e+00> : vector<4x128xf32>
    %14 = tpu.matmul %5, %13, %cst_14 {dimension_numbers = #tpu.dot_dimension_numbers<[1], [0], [0], [1], [0, 0, 1, 1], [], []>} : vector<4x8xf32>, vector<8x128xf32>, vector<4x128xf32> -> vector<4x128xf32>
    %15 = arith.mulf %8, %8 : vector<4x128xf32>
    %16 = arith.mulf %11, %11 : vector<4x128xf32>
    %17 = arith.addf %15, %16 : vector<4x128xf32>
    %18 = arith.mulf %14, %14 : vector<4x128xf32>
    %19 = arith.addf %17, %18 : vector<4x128xf32>
    %20 = math.sqrt %19 : vector<4x128xf32>
    %cst_15 = arith.constant 9.99999997E-7 : f32
    %21 = vector.broadcast %cst_15 : f32 to vector<4x128xf32>
    %22 = arith.addf %20, %21 : vector<4x128xf32>
    %c0_16 = arith.constant 0 : index
    %c0_17 = arith.constant 0 : index
    %23 = vector.load %arg4[%c0_16, %c0_17] : memref<4x1xf32, #tpu.memory_space<vmem>>, vector<4x1xf32>
    %cst_18 = arith.constant dense<0.000000e+00> : vector<4xf32>
    %24 = vector.multi_reduction <add>, %22, %cst_18 [1] : vector<4x128xf32> to vector<4xf32>
    %25 = vector.shape_cast %24 : vector<4xf32> to vector<4x1xf32>
    %26 = arith.addf %23, %25 : vector<4x1xf32>
    %c0_19 = arith.constant 0 : index
    %c0_20 = arith.constant 0 : index
    %27 = vector.load %arg4[%c0_19, %c0_20] : memref<4x1xf32, #tpu.memory_space<vmem>>, vector<4x1xf32>
    tpu.vector_store %arg4[%c0_19, %c0_20], %26 {strides = array<i32>} : memref<4x1xf32, #tpu.memory_space<vmem>>, vector<4x1xf32>,
    %c0_21 = arith.constant 0 : index
    %c0_22 = arith.constant 0 : index
    %28 = vector.load %arg5[%c0_21, %c0_22] : memref<4x1xf32, #tpu.memory_space<vmem>>, vector<4x1xf32>
    %29 = arith.mulf %22, %22 : vector<4x128xf32>
    %cst_23 = arith.constant dense<0.000000e+00> : vector<4xf32>
    %30 = vector.multi_reduction <add>, %29, %cst_23 [1] : vector<4x128xf32> to vector<4xf32>
    %31 = vector.shape_cast %30 : vector<4xf32> to vector<4x1xf32>
    %32 = arith.addf %28, %31 : vector<4x1xf32>
    %c0_24 = arith.constant 0 : index
    %c0_25 = arith.constant 0 : index
    %33 = vector.load %arg5[%c0_24, %c0_25] : memref<4x1xf32, #tpu.memory_space<vmem>>, vector<4x1xf32>
    tpu.vector_store %arg5[%c0_24, %c0_25], %32 {strides = array<i32>} : memref<4x1xf32, #tpu.memory_space<vmem>>, vector<4x1xf32>,
    return
  }
  func.func @transform_0(%arg0: i32, %arg1: i32) -> (i32, i32, i32, i32) {
    %c0_i32 = arith.constant 0 : i32
    %c0_i32_0 = arith.constant 0 : i32
    %c0_i32_1 = arith.constant 0 : i32
    return %arg0, %c0_i32, %c0_i32_0, %arg1 : i32, i32, i32, i32
  }
  func.func @transform_1(%arg0: i32, %arg1: i32) -> (i32, i32) {
    %c0_i32 = arith.constant 0 : i32
    %c0_i32_0 = arith.constant 0 : i32
    %c0_i32_1 = arith.constant 0 : i32
    return %c0_i32, %c0_i32_0 : i32, i32
  }
  func.func @transform_2(%arg0: i32, %arg1: i32) -> (i32, i32) {
    %c0_i32 = arith.constant 0 : i32
    %c0_i32_0 = arith.constant 0 : i32
    %c0_i32_1 = arith.constant 0 : i32
    return %c0_i32, %c0_i32_0 : i32, i32
  }
  func.func @transform_3(%arg0: i32, %arg1: i32) -> (i32, i32) {
    %c0_i32 = arith.constant 0 : i32
    %c0_i32_0 = arith.constant 0 : i32
    %c0_i32_1 = arith.constant 0 : i32
    return %c0_i32, %c0_i32_0 : i32, i32
  }
}

module attributes {stable_mosaic.version = 11 : i64} {
  func.func @_final_kernel(%arg0: i32, %arg1: i32, %arg2: memref<1x3x8x128xf32, #tpu.memory_space<vmem>>, %arg3: memref<1x48x128xf32, #tpu.memory_space<vmem>>, %arg4: memref<4x8xf32, #tpu.memory_space<vmem>>, %arg5: memref<4x8xf32, #tpu.memory_space<vmem>>, %arg6: memref<4x1xf32, #tpu.memory_space<vmem>>, %arg7: memref<4x1xf32, #tpu.memory_space<vmem>>, %arg8: memref<3x4xf32, #tpu.memory_space<vmem>>, %arg9: memref<3x16x48xf32, #tpu.memory_space<vmem>>, %arg10: memref<3x48x16xf32, #tpu.memory_space<vmem>>, %arg11: memref<1x48x128xf32, #tpu.memory_space<vmem>>, %arg12: memref<1x3x3x128xf32, #tpu.memory_space<vmem>>) attributes {dimension_semantics = [#tpu.dimension_semantics<parallel>, #tpu.dimension_semantics<parallel>], iteration_bounds = array<i64: 2, 2>, scalar_prefetch = 0 : i64, scratch_operands = 0 : i64, tpu.core_type = #tpu.core_type<tc>, window_params = [{transform_indices = @transform_0, window_bounds = array<i64: 1, 3, 8, 128>}, {transform_indices = @transform_1, window_bounds = array<i64: 1, 48, 128>}, {pipeline_mode = #tpu.pipeline_mode<synchronous>, transform_indices = @transform_2, window_bounds = array<i64: 4, 8>}, {pipeline_mode = #tpu.pipeline_mode<synchronous>, transform_indices = @transform_3, window_bounds = array<i64: 4, 8>}, {pipeline_mode = #tpu.pipeline_mode<synchronous>, transform_indices = @transform_4, window_bounds = array<i64: 4, 1>}, {pipeline_mode = #tpu.pipeline_mode<synchronous>, transform_indices = @transform_5, window_bounds = array<i64: 4, 1>}, {pipeline_mode = #tpu.pipeline_mode<synchronous>, transform_indices = @transform_6, window_bounds = array<i64: 3, 4>}, {pipeline_mode = #tpu.pipeline_mode<synchronous>, transform_indices = @transform_7, window_bounds = array<i64: 3, 16, 48>}, {pipeline_mode = #tpu.pipeline_mode<synchronous>, transform_indices = @transform_8, window_bounds = array<i64: 3, 48, 16>}, {transform_indices = @transform_9, window_bounds = array<i64: 1, 48, 128>}, {transform_indices = @transform_10, window_bounds = array<i64: 1, 3, 3, 128>}]} {
    %c0 = arith.constant 0 : index
    %c0_0 = arith.constant 0 : index
    %0 = vector.load %arg4[%c0, %c0_0] : memref<4x8xf32, #tpu.memory_space<vmem>>, vector<4x8xf32>
    %c0_1 = arith.constant 0 : index
    %c0_2 = arith.constant 0 : index
    %1 = vector.load %arg5[%c0_1, %c0_2] : memref<4x8xf32, #tpu.memory_space<vmem>>, vector<4x8xf32>
    %c0_3 = arith.constant 0 : index
    %c0_4 = arith.constant 0 : index
    %c0_5 = arith.constant 0 : index
    %c0_6 = arith.constant 0 : index
    %2 = vector.load %arg2[%c0_3, %c0_4, %c0_5, %c0_6] : memref<1x3x8x128xf32, #tpu.memory_space<vmem>>, vector<1x1x8x128xf32>
    %3 = vector.shape_cast %2 : vector<1x1x8x128xf32> to vector<8x128xf32>
    %c0_7 = arith.constant 0 : index
    %c1 = arith.constant 1 : index
    %c0_8 = arith.constant 0 : index
    %c0_9 = arith.constant 0 : index
    %4 = vector.load %arg2[%c0_7, %c1, %c0_8, %c0_9] : memref<1x3x8x128xf32, #tpu.memory_space<vmem>>, vector<1x1x8x128xf32>
    %5 = vector.shape_cast %4 : vector<1x1x8x128xf32> to vector<8x128xf32>
    %c0_10 = arith.constant 0 : index
    %c2 = arith.constant 2 : index
    %c0_11 = arith.constant 0 : index
    %c0_12 = arith.constant 0 : index
    %6 = vector.load %arg2[%c0_10, %c2, %c0_11, %c0_12] : memref<1x3x8x128xf32, #tpu.memory_space<vmem>>, vector<1x1x8x128xf32>
    %7 = vector.shape_cast %6 : vector<1x1x8x128xf32> to vector<8x128xf32>
    %cst = arith.constant dense<0.000000e+00> : vector<4x128xf32>
    %8 = tpu.matmul %0, %3, %cst {dimension_numbers = #tpu.dot_dimension_numbers<[1], [0], [0], [1], [0, 0, 1, 1], [], []>} : vector<4x8xf32>, vector<8x128xf32>, vector<4x128xf32> -> vector<4x128xf32>
    %cst_13 = arith.constant dense<0.000000e+00> : vector<4x128xf32>
    %9 = tpu.matmul %0, %5, %cst_13 {dimension_numbers = #tpu.dot_dimension_numbers<[1], [0], [0], [1], [0, 0, 1, 1], [], []>} : vector<4x8xf32>, vector<8x128xf32>, vector<4x128xf32> -> vector<4x128xf32>
    %cst_14 = arith.constant dense<0.000000e+00> : vector<4x128xf32>
    %10 = tpu.matmul %0, %7, %cst_14 {dimension_numbers = #tpu.dot_dimension_numbers<[1], [0], [0], [1], [0, 0, 1, 1], [], []>} : vector<4x8xf32>, vector<8x128xf32>, vector<4x128xf32> -> vector<4x128xf32>
    %cst_15 = arith.constant dense<0.000000e+00> : vector<4x128xf32>
    %11 = tpu.matmul %1, %3, %cst_15 {dimension_numbers = #tpu.dot_dimension_numbers<[1], [0], [0], [1], [0, 0, 1, 1], [], []>} : vector<4x8xf32>, vector<8x128xf32>, vector<4x128xf32> -> vector<4x128xf32>
    %cst_16 = arith.constant dense<0.000000e+00> : vector<4x128xf32>
    %12 = tpu.matmul %1, %5, %cst_16 {dimension_numbers = #tpu.dot_dimension_numbers<[1], [0], [0], [1], [0, 0, 1, 1], [], []>} : vector<4x8xf32>, vector<8x128xf32>, vector<4x128xf32> -> vector<4x128xf32>
    %cst_17 = arith.constant dense<0.000000e+00> : vector<4x128xf32>
    %13 = tpu.matmul %1, %7, %cst_17 {dimension_numbers = #tpu.dot_dimension_numbers<[1], [0], [0], [1], [0, 0, 1, 1], [], []>} : vector<4x8xf32>, vector<8x128xf32>, vector<4x128xf32> -> vector<4x128xf32>
    %c0_18 = arith.constant 0 : index
    %c0_19 = arith.constant 0 : index
    %14 = vector.load %arg6[%c0_18, %c0_19] : memref<4x1xf32, #tpu.memory_space<vmem>>, vector<4x1xf32>
    %c0_20 = arith.constant 0 : index
    %c0_21 = arith.constant 0 : index
    %15 = vector.load %arg7[%c0_20, %c0_21] : memref<4x1xf32, #tpu.memory_space<vmem>>, vector<4x1xf32>
    %16 = arith.mulf %8, %8 : vector<4x128xf32>
    %17 = arith.mulf %9, %9 : vector<4x128xf32>
    %18 = arith.addf %16, %17 : vector<4x128xf32>
    %19 = arith.mulf %10, %10 : vector<4x128xf32>
    %20 = arith.addf %18, %19 : vector<4x128xf32>
    %21 = math.sqrt %20 : vector<4x128xf32>
    %cst_22 = arith.constant 9.99999997E-7 : f32
    %22 = vector.broadcast %cst_22 : f32 to vector<4x128xf32>
    %23 = arith.addf %21, %22 : vector<4x128xf32>
    %24 = tpu.reciprocal %23 : vector<4x128xf32> -> vector<4x128xf32>
    %25 = vector.broadcast %15 : vector<4x1xf32> to vector<4x128xf32>
    %26 = arith.mulf %25, %24 : vector<4x128xf32>
    %27 = vector.broadcast %14 : vector<4x1xf32> to vector<4x128xf32>
    %28 = arith.addf %27, %26 : vector<4x128xf32>
    %29 = arith.mulf %8, %28 : vector<4x128xf32>
    %30 = arith.mulf %9, %28 : vector<4x128xf32>
    %31 = arith.mulf %10, %28 : vector<4x128xf32>
    %32 = arith.mulf %29, %11 : vector<4x128xf32>
    %33 = arith.mulf %30, %12 : vector<4x128xf32>
    %34 = arith.addf %32, %33 : vector<4x128xf32>
    %35 = arith.mulf %31, %13 : vector<4x128xf32>
    %36 = arith.addf %34, %35 : vector<4x128xf32>
    %37 = arith.mulf %11, %11 : vector<4x128xf32>
    %38 = arith.mulf %12, %12 : vector<4x128xf32>
    %39 = arith.addf %37, %38 : vector<4x128xf32>
    %40 = arith.mulf %13, %13 : vector<4x128xf32>
    %41 = arith.addf %39, %40 : vector<4x128xf32>
    %cst_23 = arith.constant 9.99999997E-7 : f32
    %42 = vector.broadcast %cst_23 : f32 to vector<4x128xf32>
    %43 = arith.addf %41, %42 : vector<4x128xf32>
    %44 = tpu.reciprocal %43 : vector<4x128xf32> -> vector<4x128xf32>
    %cst_24 = arith.constant 0.000000e+00 : f32
    %45 = vector.broadcast %cst_24 : f32 to vector<4x128xf32>
    %46 = arith.cmpf olt, %36, %45 : vector<4x128xf32>
    %47 = arith.mulf %36, %44 : vector<4x128xf32>
    %cst_25 = arith.constant 0.000000e+00 : f32
    %48 = vector.broadcast %cst_25 : f32 to vector<4x128xf32>
    %49 = arith.select %46, %47, %48 : vector<4x128xi1>, vector<4x128xf32>
    %cst_26 = arith.constant 8.000000e-01 : f32
    %50 = vector.broadcast %cst_26 : f32 to vector<4x128xf32>
    %51 = arith.mulf %50, %49 : vector<4x128xf32>
    %52 = arith.mulf %51, %11 : vector<4x128xf32>
    %53 = arith.subf %29, %52 : vector<4x128xf32>
    %54 = arith.mulf %51, %12 : vector<4x128xf32>
    %55 = arith.subf %30, %54 : vector<4x128xf32>
    %56 = arith.mulf %51, %13 : vector<4x128xf32>
    %57 = arith.subf %31, %56 : vector<4x128xf32>
    %c0_27 = arith.constant 0 : index
    %c0_28 = arith.constant 0 : index
    %58 = vector.load %arg8[%c0_27, %c0_28] : memref<3x4xf32, #tpu.memory_space<vmem>>, vector<3x4xf32>
    %cst_29 = arith.constant dense<0.000000e+00> : vector<3x128xf32>
    %59 = tpu.matmul %58, %53, %cst_29 {dimension_numbers = #tpu.dot_dimension_numbers<[1], [0], [0], [1], [0, 0, 1, 1], [], []>} : vector<3x4xf32>, vector<4x128xf32>, vector<3x128xf32> -> vector<3x128xf32>
    %cst_30 = arith.constant dense<0.000000e+00> : vector<3x128xf32>
    %60 = tpu.matmul %58, %55, %cst_30 {dimension_numbers = #tpu.dot_dimension_numbers<[1], [0], [0], [1], [0, 0, 1, 1], [], []>} : vector<3x4xf32>, vector<4x128xf32>, vector<3x128xf32> -> vector<3x128xf32>
    %cst_31 = arith.constant dense<0.000000e+00> : vector<3x128xf32>
    %61 = tpu.matmul %58, %57, %cst_31 {dimension_numbers = #tpu.dot_dimension_numbers<[1], [0], [0], [1], [0, 0, 1, 1], [], []>} : vector<3x4xf32>, vector<4x128xf32>, vector<3x128xf32> -> vector<3x128xf32>
    %c0_32 = arith.constant 0 : index
    %c0_33 = arith.constant 0 : index
    %c0_34 = arith.constant 0 : index
    %c0_35 = arith.constant 0 : index
    %62 = vector.load %arg12[%c0_32, %c0_33, %c0_34, %c0_35] : memref<1x3x3x128xf32, #tpu.memory_space<vmem>>, vector<1x1x3x128xf32>
    %63 = vector.shape_cast %62 : vector<1x1x3x128xf32> to vector<3x128xf32>
    %64 = vector.shape_cast %59 : vector<3x128xf32> to vector<1x1x3x128xf32>
    tpu.vector_store %arg12[%c0_32, %c0_33, %c0_34, %c0_35], %64 {strides = array<i32>} : memref<1x3x3x128xf32, #tpu.memory_space<vmem>>, vector<1x1x3x128xf32>,
    %c0_36 = arith.constant 0 : index
    %c1_37 = arith.constant 1 : index
    %c0_38 = arith.constant 0 : index
    %c0_39 = arith.constant 0 : index
    %65 = vector.load %arg12[%c0_36, %c1_37, %c0_38, %c0_39] : memref<1x3x3x128xf32, #tpu.memory_space<vmem>>, vector<1x1x3x128xf32>
    %66 = vector.shape_cast %65 : vector<1x1x3x128xf32> to vector<3x128xf32>
    %67 = vector.shape_cast %60 : vector<3x128xf32> to vector<1x1x3x128xf32>
    tpu.vector_store %arg12[%c0_36, %c1_37, %c0_38, %c0_39], %67 {strides = array<i32>} : memref<1x3x3x128xf32, #tpu.memory_space<vmem>>, vector<1x1x3x128xf32>,
    %c0_40 = arith.constant 0 : index
    %c2_41 = arith.constant 2 : index
    %c0_42 = arith.constant 0 : index
    %c0_43 = arith.constant 0 : index
    %68 = vector.load %arg12[%c0_40, %c2_41, %c0_42, %c0_43] : memref<1x3x3x128xf32, #tpu.memory_space<vmem>>, vector<1x1x3x128xf32>
    %69 = vector.shape_cast %68 : vector<1x1x3x128xf32> to vector<3x128xf32>
    %70 = vector.shape_cast %61 : vector<3x128xf32> to vector<1x1x3x128xf32>
    tpu.vector_store %arg12[%c0_40, %c2_41, %c0_42, %c0_43], %70 {strides = array<i32>} : memref<1x3x3x128xf32, #tpu.memory_space<vmem>>, vector<1x1x3x128xf32>,
    %c0_44 = arith.constant 0 : index
    %c0_45 = arith.constant 0 : index
    %c0_46 = arith.constant 0 : index
    %71 = vector.load %arg3[%c0_44, %c0_45, %c0_46] : memref<1x48x128xf32, #tpu.memory_space<vmem>>, vector<1x48x128xf32>
    %72 = vector.shape_cast %71 : vector<1x48x128xf32> to vector<48x128xf32>
    %c0_47 = arith.constant 0 : index
    %c0_48 = arith.constant 0 : index
    %c0_49 = arith.constant 0 : index
    %73 = vector.load %arg9[%c0_47, %c0_48, %c0_49] : memref<3x16x48xf32, #tpu.memory_space<vmem>>, vector<1x16x48xf32>
    %74 = vector.shape_cast %73 : vector<1x16x48xf32> to vector<16x48xf32>
    %cst_50 = arith.constant dense<0.000000e+00> : vector<16x128xf32>
    %75 = tpu.matmul %74, %72, %cst_50 {dimension_numbers = #tpu.dot_dimension_numbers<[1], [0], [0], [1], [0, 0, 1, 1], [], []>} : vector<16x48xf32>, vector<48x128xf32>, vector<16x128xf32> -> vector<16x128xf32>
    %c1_51 = arith.constant 1 : index
    %c0_52 = arith.constant 0 : index
    %c0_53 = arith.constant 0 : index
    %76 = vector.load %arg9[%c1_51, %c0_52, %c0_53] : memref<3x16x48xf32, #tpu.memory_space<vmem>>, vector<1x16x48xf32>
    %77 = vector.shape_cast %76 : vector<1x16x48xf32> to vector<16x48xf32>
    %cst_54 = arith.constant dense<0.000000e+00> : vector<16x128xf32>
    %78 = tpu.matmul %77, %72, %cst_54 {dimension_numbers = #tpu.dot_dimension_numbers<[1], [0], [0], [1], [0, 0, 1, 1], [], []>} : vector<16x48xf32>, vector<48x128xf32>, vector<16x128xf32> -> vector<16x128xf32>
    %c2_55 = arith.constant 2 : index
    %c0_56 = arith.constant 0 : index
    %c0_57 = arith.constant 0 : index
    %79 = vector.load %arg9[%c2_55, %c0_56, %c0_57] : memref<3x16x48xf32, #tpu.memory_space<vmem>>, vector<1x16x48xf32>
    %80 = vector.shape_cast %79 : vector<1x16x48xf32> to vector<16x48xf32>
    %cst_58 = arith.constant dense<0.000000e+00> : vector<16x128xf32>
    %81 = tpu.matmul %80, %72, %cst_58 {dimension_numbers = #tpu.dot_dimension_numbers<[1], [0], [0], [1], [0, 0, 1, 1], [], []>} : vector<16x48xf32>, vector<48x128xf32>, vector<16x128xf32> -> vector<16x128xf32>
    %82 = vector.extract_strided_slice %59 {offsets = [0, 0], sizes = [1, 128], strides = [1, 1]} : vector<3x128xf32> to vector<1x128xf32>
    %83 = vector.broadcast %82 : vector<1x128xf32> to vector<16x128xf32>
    %84 = arith.mulf %75, %83 : vector<16x128xf32>
    %85 = vector.extract_strided_slice %60 {offsets = [0, 0], sizes = [1, 128], strides = [1, 1]} : vector<3x128xf32> to vector<1x128xf32>
    %86 = vector.broadcast %85 : vector<1x128xf32> to vector<16x128xf32>
    %87 = arith.mulf %78, %86 : vector<16x128xf32>
    %88 = arith.addf %84, %87 : vector<16x128xf32>
    %89 = vector.extract_strided_slice %61 {offsets = [0, 0], sizes = [1, 128], strides = [1, 1]} : vector<3x128xf32> to vector<1x128xf32>
    %90 = vector.broadcast %89 : vector<1x128xf32> to vector<16x128xf32>
    %91 = arith.mulf %81, %90 : vector<16x128xf32>
    %92 = arith.addf %88, %91 : vector<16x128xf32>
    %c0_59 = arith.constant 0 : index
    %c0_60 = arith.constant 0 : index
    %c0_61 = arith.constant 0 : index
    %93 = vector.load %arg10[%c0_59, %c0_60, %c0_61] : memref<3x48x16xf32, #tpu.memory_space<vmem>>, vector<1x48x16xf32>
    %94 = vector.shape_cast %93 : vector<1x48x16xf32> to vector<48x16xf32>
    %cst_62 = arith.constant dense<0.000000e+00> : vector<48x128xf32>
    %95 = tpu.matmul %94, %92, %cst_62 {dimension_numbers = #tpu.dot_dimension_numbers<[1], [0], [0], [1], [0, 0, 1, 1], [], []>} : vector<48x16xf32>, vector<16x128xf32>, vector<48x128xf32> -> vector<48x128xf32>
    %96 = vector.extract_strided_slice %59 {offsets = [1, 0], sizes = [1, 128], strides = [1, 1]} : vector<3x128xf32> to vector<1x128xf32>
    %97 = vector.broadcast %96 : vector<1x128xf32> to vector<16x128xf32>
    %98 = arith.mulf %75, %97 : vector<16x128xf32>
    %99 = vector.extract_strided_slice %60 {offsets = [1, 0], sizes = [1, 128], strides = [1, 1]} : vector<3x128xf32> to vector<1x128xf32>
    %100 = vector.broadcast %99 : vector<1x128xf32> to vector<16x128xf32>
    %101 = arith.mulf %78, %100 : vector<16x128xf32>
    %102 = arith.addf %98, %101 : vector<16x128xf32>
    %103 = vector.extract_strided_slice %61 {offsets = [1, 0], sizes = [1, 128], strides = [1, 1]} : vector<3x128xf32> to vector<1x128xf32>
    %104 = vector.broadcast %103 : vector<1x128xf32> to vector<16x128xf32>
    %105 = arith.mulf %81, %104 : vector<16x128xf32>
    %106 = arith.addf %102, %105 : vector<16x128xf32>
    %c1_63 = arith.constant 1 : index
    %c0_64 = arith.constant 0 : index
    %c0_65 = arith.constant 0 : index
    %107 = vector.load %arg10[%c1_63, %c0_64, %c0_65] : memref<3x48x16xf32, #tpu.memory_space<vmem>>, vector<1x48x16xf32>
    %108 = vector.shape_cast %107 : vector<1x48x16xf32> to vector<48x16xf32>
    %cst_66 = arith.constant dense<0.000000e+00> : vector<48x128xf32>
    %109 = tpu.matmul %108, %106, %cst_66 {dimension_numbers = #tpu.dot_dimension_numbers<[1], [0], [0], [1], [0, 0, 1, 1], [], []>} : vector<48x16xf32>, vector<16x128xf32>, vector<48x128xf32> -> vector<48x128xf32>
    %110 = arith.addf %95, %109 : vector<48x128xf32>
    %111 = vector.extract_strided_slice %59 {offsets = [2, 0], sizes = [1, 128], strides = [1, 1]} : vector<3x128xf32> to vector<1x128xf32>
    %112 = vector.broadcast %111 : vector<1x128xf32> to vector<16x128xf32>
    %113 = arith.mulf %75, %112 : vector<16x128xf32>
    %114 = vector.extract_strided_slice %60 {offsets = [2, 0], sizes = [1, 128], strides = [1, 1]} : vector<3x128xf32> to vector<1x128xf32>
    %115 = vector.broadcast %114 : vector<1x128xf32> to vector<16x128xf32>
    %116 = arith.mulf %78, %115 : vector<16x128xf32>
    %117 = arith.addf %113, %116 : vector<16x128xf32>
    %118 = vector.extract_strided_slice %61 {offsets = [2, 0], sizes = [1, 128], strides = [1, 1]} : vector<3x128xf32> to vector<1x128xf32>
    %119 = vector.broadcast %118 : vector<1x128xf32> to vector<16x128xf32>
    %120 = arith.mulf %81, %119 : vector<16x128xf32>
    %121 = arith.addf %117, %120 : vector<16x128xf32>
    %c2_67 = arith.constant 2 : index
    %c0_68 = arith.constant 0 : index
    %c0_69 = arith.constant 0 : index
    %122 = vector.load %arg10[%c2_67, %c0_68, %c0_69] : memref<3x48x16xf32, #tpu.memory_space<vmem>>, vector<1x48x16xf32>
    %123 = vector.shape_cast %122 : vector<1x48x16xf32> to vector<48x16xf32>
    %cst_70 = arith.constant dense<0.000000e+00> : vector<48x128xf32>
    %124 = tpu.matmul %123, %121, %cst_70 {dimension_numbers = #tpu.dot_dimension_numbers<[1], [0], [0], [1], [0, 0, 1, 1], [], []>} : vector<48x16xf32>, vector<16x128xf32>, vector<48x128xf32> -> vector<48x128xf32>
    %125 = arith.addf %110, %124 : vector<48x128xf32>
    %c0_71 = arith.constant 0 : index
    %c0_72 = arith.constant 0 : index
    %c0_73 = arith.constant 0 : index
    %126 = vector.load %arg11[%c0_71, %c0_72, %c0_73] : memref<1x48x128xf32, #tpu.memory_space<vmem>>, vector<1x48x128xf32>
    %127 = vector.shape_cast %126 : vector<1x48x128xf32> to vector<48x128xf32>
    %128 = vector.shape_cast %125 : vector<48x128xf32> to vector<1x48x128xf32>
    tpu.vector_store %arg11[%c0_71, %c0_72, %c0_73], %128 {strides = array<i32>} : memref<1x48x128xf32, #tpu.memory_space<vmem>>, vector<1x48x128xf32>,
    return
  }
  func.func @transform_0(%arg0: i32, %arg1: i32) -> (i32, i32, i32, i32) {
    %c0_i32 = arith.constant 0 : i32
    %c0_i32_0 = arith.constant 0 : i32
    %c0_i32_1 = arith.constant 0 : i32
    return %arg0, %c0_i32, %c0_i32_0, %arg1 : i32, i32, i32, i32
  }
  func.func @transform_1(%arg0: i32, %arg1: i32) -> (i32, i32, i32) {
    %c0_i32 = arith.constant 0 : i32
    %c0_i32_0 = arith.constant 0 : i32
    return %arg0, %c0_i32, %arg1 : i32, i32, i32
  }
  func.func @transform_2(%arg0: i32, %arg1: i32) -> (i32, i32) {
    %c0_i32 = arith.constant 0 : i32
    %c0_i32_0 = arith.constant 0 : i32
    %c0_i32_1 = arith.constant 0 : i32
    return %c0_i32, %c0_i32_0 : i32, i32
  }
  func.func @transform_3(%arg0: i32, %arg1: i32) -> (i32, i32) {
    %c0_i32 = arith.constant 0 : i32
    %c0_i32_0 = arith.constant 0 : i32
    %c0_i32_1 = arith.constant 0 : i32
    return %c0_i32, %c0_i32_0 : i32, i32
  }
  func.func @transform_4(%arg0: i32, %arg1: i32) -> (i32, i32) {
    %c0_i32 = arith.constant 0 : i32
    %c0_i32_0 = arith.constant 0 : i32
    %c0_i32_1 = arith.constant 0 : i32
    return %c0_i32, %c0_i32_0 : i32, i32
  }
  func.func @transform_5(%arg0: i32, %arg1: i32) -> (i32, i32) {
    %c0_i32 = arith.constant 0 : i32
    %c0_i32_0 = arith.constant 0 : i32
    %c0_i32_1 = arith.constant 0 : i32
    return %c0_i32, %c0_i32_0 : i32, i32
  }
  func.func @transform_6(%arg0: i32, %arg1: i32) -> (i32, i32) {
    %c0_i32 = arith.constant 0 : i32
    %c0_i32_0 = arith.constant 0 : i32
    %c0_i32_1 = arith.constant 0 : i32
    return %c0_i32, %c0_i32_0 : i32, i32
  }
  func.func @transform_7(%arg0: i32, %arg1: i32) -> (i32, i32, i32) {
    %c0_i32 = arith.constant 0 : i32
    %c0_i32_0 = arith.constant 0 : i32
    %c0_i32_1 = arith.constant 0 : i32
    %c0_i32_2 = arith.constant 0 : i32
    return %c0_i32, %c0_i32_0, %c0_i32_1 : i32, i32, i32
  }
  func.func @transform_8(%arg0: i32, %arg1: i32) -> (i32, i32, i32) {
    %c0_i32 = arith.constant 0 : i32
    %c0_i32_0 = arith.constant 0 : i32
    %c0_i32_1 = arith.constant 0 : i32
    %c0_i32_2 = arith.constant 0 : i32
    return %c0_i32, %c0_i32_0, %c0_i32_1 : i32, i32, i32
  }
  func.func @transform_9(%arg0: i32, %arg1: i32) -> (i32, i32, i32) {
    %c0_i32 = arith.constant 0 : i32
    %c0_i32_0 = arith.constant 0 : i32
    return %arg0, %c0_i32, %arg1 : i32, i32, i32
  }
  func.func @transform_10(%arg0: i32, %arg1: i32) -> (i32, i32, i32, i32) {
    %c0_i32 = arith.constant 0 : i32
    %c0_i32_0 = arith.constant 0 : i32
    %c0_i32_1 = arith.constant 0 : i32
    return %arg0, %c0_i32, %c0_i32_0, %arg1 : i32, i32, i32, i32
  }
}

</mosaic_0001>

<bundles_post_ra>
// kernel: vn_std_feature.4
= control target key start
LH: loop header
LB: loop body
LE: loop exit
PB: predicated region body
PF: predicated region fallthrough
CT: control target
= control target key end

     0   :  { %s764_s12 = smov 0   ;;  %s766_s13 = smov 0   ;;  %s888_s0 = inlined_call_operand.vmem [shape: f32[2,48,256], index: 0, kind: input, shape index: {}]   ;;  %s889_s1 = inlined_call_operand.vmem [shape: f32[3,8,48], index: 1, kind: input, shape index: {}]   ;;  %s890_s2 = inlined_call_operand.vmem [shape: f32[8,1], index: 2, kind: output, shape index: {0}]   ;;  %s891_s3 = inlined_call_operand.vmem [shape: f32[8,1], index: 3, kind: output, shape index: {1}]  }
   0x1   :  { %s768_s14 = smov 0   ;;  %s770_s15 = smov 0  }
   0x2   :  { %s772_s16 = smov 0   ;;  %s774_s17 = smov 0  }
   0x3   :  { %s776_s18 = smov 0  }
   0x4 LB: > { %s23_s19 = sadd.s32 1, %s731_s16  ;;  %s26_s20 = sadd.s32 1, %s735_s17  ;;  %s739_s18 = sphi %s776_s18, %s14_s18   ;;  %s735_s17 = sphi %s774_s17, %s897_s17   ;;  %s731_s16 = sphi %s772_s16, %s896_s16   ;;  %s727_s15 = sphi %s770_s15, %s895_s15   ;;  %s723_s14 = sphi %s768_s14, %s894_s14   ;;  %s719_s13 = sphi %s766_s13, %s893_s13   ;;  %s715_s12 = sphi %s764_s12, %s892_s12  }
   0x5   : > { %p24_p0 = scmp.ge.s32.totalorder %s23_s19, 2  ;;  %p42_p1 = scmp.ne.s32.totalorder %s719_s13, %s715_s12 }
   0x6   : > { %p43_p2 = scmp.eq.s32.totalorder %s739_s18, 0  ;;  %s35_s24 = sadd.s32 1, %s719_s13 }
   0x7   : > { %s899_s19 = smov (%p24_p0, %s23_s19), 0  ;;  %s901_s20 = smov (!%p24_p0, %s26_s20), %s735_s17 }
   0x8   : > { %p44_p3 = por %p43_p2, %p42_p1  ;;  %p28_p4 = scmp.ge.s32.totalorder %s901_s20, 2 }
   0x9   : > { %s31_s21 = ssub.s32 %s731_s16, %s899_s19  ;;  %p545_p6 = scmp.ge.s32.totalorder %s739_s18, 4 }
   0xa   : > { %s903_s20 = smov (%p28_p4, %s901_s20), 0 }
   0xb   : > { %s30_s22 = ssub.s32 %s735_s17, %s903_s20  ;;  %134 = sbr.rel (%p545_p6) target bundleno = 26 (0x1a), region = 20 }
   0xc   : > { %s32_s23 = sor.u32 %s31_s21, %s30_s22 }
   0xd   : > { %p33_p5 = scmp.eq.s32.totalorder %s32_s23, 0 }
   0xf   : > { %s815_s25 = scalar_select %p33_p5, %s719_s13, %s35_s24  }
  0x10   : > { %137 = sbr.rel (!%p44_p3) target bundleno = 26 (0x1a), region = 24  ;;  %s139_s26 = sand.u32 (%p44_p3), 1, %s719_s13  }
  0x11   : > { %s622_s27 = smul.u32 (%p44_p3), 12, %s735_s17 }
  0x12   : > { %s621_s28 = smul.u32 (%p44_p3), 48, %s139_s26 }
  0x13   : > { %s143_s29 = sadd.s32 (%p44_p3), %s731_s16, %s622_s27 }
  0x14   : > { %s546_s30 = sshll.u32 (%p44_p3), %s143_s29, 3  ;;  %s141_s7 = scalar_lea.vmem (%p44_p3), [#allocation2], %s621_s28 }
  0x15   : > { %s145_s6 = scalar_lea.vmem %s888_s0, %s546_s30 }
  0x16   : > { %v184_v0 = vld [vmem:[%s145_s6] sm:$0xff]  ;;  %v186_v1 = vld [vmem:[%s145_s6 + $0x10] sm:$0xff] }
  0x17   : > { %v188_v2 = vld [vmem:[%s145_s6 + $0x20] sm:$0xff]  ;;  %185 = vst [vmem:[%s141_s7] sm:$0xff] %v184_v0  ;;  %187 = vst [vmem:[%s141_s7 + $0x8] sm:$0xff] %v186_v1  ;;  %v190_v3 = vld [vmem:[%s145_s6 + $0x30] sm:$0xff] }
  0x18   : > { %189 = vst [vmem:[%s141_s7 + $0x10] sm:$0xff] %v188_v2  ;;  %v192_v4 = vld [vmem:[%s145_s6 + $0x40] sm:$0xff]  ;;  %v194_v5 = vld [vmem:[%s145_s6 + $0x50] sm:$0xff]  ;;  %191 = vst [vmem:[%s141_s7 + $0x18] sm:$0xff] %v190_v3 }
  0x19   : > { %193 = vst [vmem:[%s141_s7 + $0x20] sm:$0xff] %v192_v4  ;;  %195 = vst [vmem:[%s141_s7 + $0x28] sm:$0xff] %v194_v5 }
  0x1a PF: > { %p547_p7 = scmp.ge.s32.totalorder %s739_s18, 1  ;;  %p200_p8 = scmp.lt.s32.totalorder %s739_s18, 5 }
  0x1c   : > { %p201_p9 = pnand %p547_p7, %p200_p8 }
  0x1d   : > { %s207_s8 = sand.u32 (!%p201_p9), 1, %s715_s12   ;;  %p225_p10 = scmp.eq.s32.totalorder (!%p201_p9), %s727_s15, 0 }
  0x1e   : > { %204 = sbr.rel (%p201_p9) target bundleno = 430 (0x1ae), region = 62  ;;  %p226_p11 = scmp.eq.s32.totalorder (!%p201_p9), %s723_s14, 0 }
  0x1f   : > { %s623_s9 = smul.u32 (!%p201_p9), 48, %s207_s8 }
  0x20   : > { %p227_p12 = pnand (!%p201_p9), %p226_p11, %p225_p10 }
  0x21   : > { %s829_s10 = scalar_lea.vmem (!%p201_p9), [#allocation2], %s623_s9 }
  0x23   : > { %230 = sbr.rel (%p227_p12) target bundleno = 42 (0x2a), region = 70 }
  0x28   : > { %vm231_vm0 = vcmask 7168   ;;  %v741_v6 = vmov 0.0  }
  0x29   : > { %232 = vst.msk [vmem:[%s890_s2] sm:$0xff] %vm231_vm0, %v741_v6  ;;  %233 = vst.msk [vmem:[%s891_s3] sm:$0xff] %vm231_vm0, %v741_v6 }
  0x2a PF: > { %v239_v7 = vld [vmem:[%s829_s10 + $0x28] sm:$0xff]  ;;  %v742_v8 = vmov 0.0   ;;  %v238_v9 = vld [vmem:[%s829_s10 + $0x20] sm:$0xff]  ;;  %v237_v10 = vld [vmem:[%s829_s10 + $0x18] sm:$0xff]  ;;  %vm241_vm1 = vcmask 392192   ;;  %vm743_vm2 = vmmov 0  }
  0x2b   : > { %576 = vmatprep.subr.mxu0 %v742_v8  ;;  %591 = vmatprep.subr.mxu1 %v742_v8  ;;  %v236_v11 = vld [vmem:[%s829_s10 + $0x10] sm:$0xff]  ;;  %v235_v12 = vld [vmem:[%s829_s10 + $0x8] sm:$0xff]  ;;  %v234_v13 = vld [vmem:[%s829_s10] sm:$0xff]  ;;  %vm482_vm5 = vcmask 7168  }
  0x2c   : > { %577 = vmatpush3.msra.mxu0 %v239_v7  ;;  %592 = vmatpush3.msra.mxu1 %v239_v7  ;;  %v240_v14 = vld [vmem:[%s889_s1] sm:$0xff]  ;;  %v549_v15 = vld [vmem:[%s889_s1 + $0x8] sm:$0xff]  ;;  %v551_v16 = vld [vmem:[%s889_s1 + $0x10] sm:$0xff] }
  0x2d   : > { %578 = vmatprep.subr.mxu0 %v742_v8  ;;  %593 = vmatprep.subr.mxu1 %v742_v8 }
  0x2e   : > { %579 = vmatpush3.msra.mxu0 %v238_v9  ;;  %594 = vmatpush3.msra.mxu1 %v238_v9 }
  0x2f   : > { %580 = vmatprep.subr.mxu0 %v742_v8  ;;  %595 = vmatprep.subr.mxu1 %v742_v8 }
  0x30   : > { %581 = vmatpush3.msra.mxu0 %v237_v10  ;;  %596 = vmatpush3.msra.mxu1 %v237_v10  ;;  %v478_v35 = vld [vmem:[%s890_s2] sm:$0xff] }
  0x31   : > { %582 = vmatprep.subr.mxu0 %v742_v8  ;;  %597 = vmatprep.subr.mxu1 %v742_v8  ;;  %v484_v38 = vld [vmem:[%s891_s3] sm:$0xff] }
  0x32   : > { %583 = vmatpush3.msra.mxu0 %v236_v11  ;;  %598 = vmatpush3.msra.mxu1 %v236_v11 }
  0x33   : > { %584 = vmatprep.subr.mxu0 %v742_v8  ;;  %599 = vmatprep.subr.mxu1 %v742_v8 }
  0x34   : > { %585 = vmatpush3.msra.mxu0 %v235_v12  ;;  %600 = vmatpush3.msra.mxu1 %v235_v12 }
  0x35   : > { %586 = vmatprep.subr.mxu0 %v742_v8  ;;  %588 = vmatprep.mubr.msk.f32.mxu0 %vm743_vm2, %v742_v8 }
  0x36   : > { %587 = vmatpush3.msra.mxu0 %v234_v13  ;;  %601 = vmatprep.subr.mxu1 %v742_v8 }
  0x37   : > { %589 = vmatmul.mubr.msk.f32.vlgmr.msra.gmra.mxu0 %vm241_vm1, %v240_v14  ;;  %602 = vmatpush3.msra.mxu1 %v234_v13 }
  0x38   : > { %603 = vmatprep.mubr.msk.f32.mxu1 %vm743_vm2, %v742_v8  ;;  %606 = vmatprep.subr.mxu0 %v742_v8 }
  0x39   : > { %604 = vmatmul.mubr.msk.f32.vlgmr.msra.gmra.mxu1 %vm241_vm1, %v549_v15  ;;  %607 = vmatpush3.msra.mxu0 %v239_v7 }
  0x3a   : > { %608 = vmatprep.subr.mxu0 %v742_v8  ;;  %618 = vmatprep.mubr.msk.f32.mxu0 %vm743_vm2, %v742_v8 }
  0x3b   : > { %609 = vmatpush3.msra.mxu0 %v238_v9 }
  0x3c   : > { %610 = vmatprep.subr.mxu0 %v742_v8 }
  0x3d   : > { %611 = vmatpush3.msra.mxu0 %v237_v10 }
  0x3e   : > { %612 = vmatprep.subr.mxu0 %v742_v8 }
  0x3f   : > { %613 = vmatpush3.msra.mxu0 %v236_v11 }
  0x40   : > { %614 = vmatprep.subr.mxu0 %v742_v8 }
  0x41   : > { %615 = vmatpush3.msra.mxu0 %v235_v12 }
  0x42   : > { %616 = vmatprep.subr.mxu0 %v742_v8 }
  0x43   : > { %617 = vmatpush3.msra.mxu0 %v234_v13 }
  0x44   : > { %619 = vmatmul.mubr.msk.f32.vlgmr.msra.gmra.mxu0 %vm241_vm1, %v551_v16 }
  0xf7   : > { %v311_v17 = vpop.f32.mrf.mxu0 }
  0xf8   : > { %v465_v21 = vmul.f32 %v311_v17, %v311_v17 }
  0xf9   : > { %v386_v18 = vpop.f32.mrf.mxu1  ;;  %v590_v19 = vpop.f32.mrf.mxu0 }
  0xfa   : > { %v466_v22 = vmul.f32 %v386_v18, %v386_v18 }
  0xfb   : > { %v605_v20 = vpop.f32.mrf.mxu1 }
  0xfc   : > { %v467_v24 = vadd.f32 %v466_v22, %v465_v21 }
 0x104   : > { %v461_v23 = vpop.f32.mrf.mxu0 }
 0x105   : > { %v468_v25 = vmul.f32 %v461_v23, %v461_v23 }
 0x106   : > { %v620_v26 = vpop.f32.mrf.mxu0 }
 0x107   : > { %v469_v27 = vadd.f32 %v468_v25, %v467_v24 }
 0x109   : > { %683 = vrsqrt.f32 %v469_v27  ;;  %vm472_vm3 = vcmp.eq.f32.partialorder %v469_v27, inf  ;;  %v475_v30 = vand.u32 2147483648, %v469_v27  ;;  %vm474_vm4 = vcmp.eq.f32.partialorder %v469_v27, 0.0 }
 0x116   : > { %v684_v28 = vpop.eup %683 }
 0x117   : > { %v471_v29 = vmul.f32 %v684_v28, %v469_v27 }
 0x119   : > { %v473_v31 = vsel %vm472_vm3, %v469_v27, %v471_v29 }
 0x11a   : > { %v476_v32 = vsel %vm474_vm4, %v475_v30, %v473_v31 }
 0x11b   : > { %v477_v33 = vadd.f32 1e-06, %v476_v32 }
 0x11d   : > { %479 = vadd.xlane.f32.xlu0 %v477_v33  ;;  %v485_v34 = vmul.f32 %v477_v33, %v477_v33 }
 0x121   : > { %486 = vadd.xlane.f32.xlu0 %v485_v34 }
 0x1a6   : > { %v480_v36 = vpop.xlane.xlu0 %479 }
 0x1a7   : > { %v481_v37 = vadd.f32 %v480_v36, %v478_v35 }
 0x1a9   : > { %483 = vst.msk [vmem:[%s890_s2] sm:$0xff] %vm482_vm5, %v481_v37 }
 0x1aa   : > { %v487_v39 = vpop.xlane.xlu0 %486 }
 0x1ab   : > { %v488_v40 = vadd.f32 %v487_v39, %v484_v38 }
 0x1ad   : > { %489 = vst.msk [vmem:[%s891_s3] sm:$0xff] %vm482_vm5, %v488_v40 }
 0x1ae PF: > { %s14_s18 = sadd.s32 1, %s739_s18   ;;  %s892_s12 = smov %s719_s13 }
 0x1af   : > { %p11_p13 = scmp.ge.s32.totalorder %s14_s18, 6   ;;  %s893_s13 = smov %s815_s25 }
 0x1b0   : > { %s894_s14 = smov %s731_s16  ;;  %s895_s15 = smov %s735_s17 }
 0x1b1   : > { %s896_s16 = smov %s899_s19  ;;  %s897_s17 = smov %s903_s20 }
 0x1b2   :  { %13 = sbr.rel (!%p11_p13) target bundleno = 4 (0x4), region = 111 }

// kernel: vn_std_feature.5
= control target key start
LH: loop header
LB: loop body
LE: loop exit
PB: predicated region body
PF: predicated region fallthrough
CT: control target
= control target key end

     0   :  { %s1242_s18 = smov 0   ;;  %s1244_s19 = smov 0   ;;  %s1468_s0 = inlined_call_operand.vmem [shape: f32[2,48,256], index: 0, kind: input, shape index: {}]   ;;  %s1469_s1 = inlined_call_operand.vmem [shape: f32[3,8,48], index: 1, kind: input, shape index: {}]   ;;  %s1470_s2 = inlined_call_operand.vmem [shape: f32[3,8,48], index: 2, kind: input, shape index: {}]   ;;  %s1471_s3 = inlined_call_operand.vmem [shape: f32[8,1], index: 3, kind: input, shape index: {}]   ;;  %s1472_s4 = inlined_call_operand.vmem [shape: f32[8,1], index: 4, kind: input, shape index: {}]   ;;  %s1473_s5 = inlined_call_operand.vmem [shape: f32[2,3,8,256], index: 5, kind: output, shape index: {}]  }
   0x1   :  { %s1246_s20 = smov 0   ;;  %s1248_s21 = smov 0  }
   0x2   :  { %s1250_s22 = smov 0   ;;  %s1252_s23 = smov 0  }
   0x3   :  { %s1254_s24 = smov 0  }
   0x4 LB: > { %s24_s25 = sadd.s32 1, %s1199_s22  ;;  %s27_s26 = sadd.s32 1, %s1203_s23  ;;  %s1207_s24 = sphi %s1254_s24, %s15_s24   ;;  %s1203_s23 = sphi %s1252_s23, %s1480_s23   ;;  %s1199_s22 = sphi %s1250_s22, %s1479_s22   ;;  %s1195_s21 = sphi %s1248_s21, %s1478_s21   ;;  %s1191_s20 = sphi %s1246_s20, %s1477_s20   ;;  %s1187_s19 = sphi %s1244_s19, %s1476_s19   ;;  %s1183_s18 = sphi %s1242_s18, %s1475_s18  }
   0x5   : > { %p25_p0 = scmp.ge.s32.totalorder %s24_s25, 2  ;;  %s929_s27 = sadd.s32 4294967295, %s1207_s24  }
   0x6   : > { %p43_p1 = scmp.ne.s32.totalorder %s1187_s19, %s1183_s18  ;;  %p44_p2 = scmp.eq.s32.totalorder %s1207_s24, 0 }
   0x7   : > { %s1482_s25 = smov (%p25_p0, %s24_s25), 0  ;;  %s1484_s26 = smov (!%p25_p0, %s27_s26), %s1203_s23 }
   0x8   : > { %p29_p3 = scmp.ge.s32.totalorder %s1484_s26, 2  ;;  %p159_p4 = scmp.eq.s32.totalorder %s929_s27, 3 }
   0x9   : > { %s32_s28 = ssub.s32 %s1199_s22, %s1482_s25  ;;  %p45_p5 = por %p44_p2, %p43_p1 }
   0xa   : > { %s1486_s26 = smov (%p29_p3, %s1484_s26), 0  ;;  %p1290_p6 = por %p159_p4, %p43_p1 }
   0xb   : > { %s31_s30 = ssub.s32 %s1203_s23, %s1486_s26  ;;  %s36_s7 = sadd.s32 1, %s1187_s19 }
   0xc   : > { %s33_s6 = sor.u32 %s32_s28, %s31_s30  ;;  %p932_p8 = scmp.ge.s32.totalorder %s1207_s24, 4 }
   0xd   : > { %p34_p7 = scmp.eq.s32.totalorder %s33_s6, 0 }
   0xe   : > { %193 = sbr.rel (%p932_p8) target bundleno = 29 (0x1d), region = 32 }
   0xf   : > { %s1298_s8 = scalar_select %p34_p7, %s1187_s19, %s36_s7  }
  0x13   : > { %196 = sbr.rel (!%p45_p5) target bundleno = 29 (0x1d), region = 36  ;;  %s198_s9 = sand.u32 (%p45_p5), 1, %s1187_s19  }
  0x14   : > { %s1083_s10 = smul.u32 (%p45_p5), 12, %s1203_s23 }
  0x15   : > { %s1082_s11 = smul.u32 (%p45_p5), 48, %s198_s9 }
  0x16   : > { %s202_s12 = sadd.s32 (%p45_p5), %s1199_s22, %s1083_s10 }
  0x17   : > { %s933_s13 = sshll.u32 (%p45_p5), %s202_s12, 3  ;;  %s200_s17 = scalar_lea.vmem (%p45_p5), [#allocation2], %s1082_s11 }
  0x18   : > { %s204_s16 = scalar_lea.vmem %s1468_s0, %s933_s13 }
  0x19   : > { %v243_v0 = vld [vmem:[%s204_s16] sm:$0xff]  ;;  %v245_v1 = vld [vmem:[%s204_s16 + $0x10] sm:$0xff] }
  0x1a   : > { %v247_v2 = vld [vmem:[%s204_s16 + $0x20] sm:$0xff]  ;;  %244 = vst [vmem:[%s200_s17] sm:$0xff] %v243_v0  ;;  %246 = vst [vmem:[%s200_s17 + $0x8] sm:$0xff] %v245_v1  ;;  %v249_v3 = vld [vmem:[%s204_s16 + $0x30] sm:$0xff] }
  0x1b   : > { %248 = vst [vmem:[%s200_s17 + $0x10] sm:$0xff] %v247_v2  ;;  %v251_v4 = vld [vmem:[%s204_s16 + $0x40] sm:$0xff]  ;;  %v253_v5 = vld [vmem:[%s204_s16 + $0x50] sm:$0xff]  ;;  %250 = vst [vmem:[%s200_s17 + $0x18] sm:$0xff] %v249_v3 }
  0x1c   : > { %252 = vst [vmem:[%s200_s17 + $0x20] sm:$0xff] %v251_v4  ;;  %254 = vst [vmem:[%s200_s17 + $0x28] sm:$0xff] %v253_v5 }
  0x1d PF: > { %p934_p9 = scmp.ge.s32.totalorder %s1207_s24, 1  ;;  %p259_p10 = scmp.lt.s32.totalorder %s1207_s24, 5 }
  0x1f   : > { %p260_p11 = pnand %p934_p9, %p259_p10 }
  0x20   : > { %s266_s27 = sand.u32 (!%p260_p11), 1, %s1183_s18  }
  0x21   : > { %263 = sbr.rel (%p260_p11) target bundleno = 327 (0x147), region = 74 }
  0x22   : > { %s1084_s28 = smul.u32 (!%p260_p11), 48, %s266_s27 }
  0x23   : > { %s1085_s10 = smul.u32 (!%p260_p11), 24, %s266_s27 }
  0x24   : > { %s268_s7 = scalar_lea.vmem (!%p260_p11), [#allocation2], %s1084_s28 }
  0x25   : > { %s291_s11 = scalar_lea.vmem (!%p260_p11), [#allocation3], %s1085_s10 }
  0x26   : > { %v1209_v6 = vmov 0.0   ;;  %vm1210_vm0 = vmmov 0   ;;  %v748_v7 = vld [vmem:[%s1472_s4] sm:$0xff]  ;;  %v1211_v8 = vmov 0   ;;  %v1321_v9 = vld [vmem:[%s268_s7 + $0x28] sm:$0xff]  ;;  %v1329_v11 = vld [vmem:[%s268_s7 + $0x18] sm:$0xff] }
  0x27   : > { %992 = vmatprep.subr.mxu0 %v1209_v6  ;;  %1007 = vmatprep.subr.mxu1 %v1209_v6  ;;  %v1323_v10 = vld [vmem:[%s268_s7 + $0x20] sm:$0xff]  ;;  %v1335_v12 = vld [vmem:[%s268_s7 + $0x10] sm:$0xff]  ;;  %v1341_v13 = vld [vmem:[%s268_s7 + $0x8] sm:$0xff]  ;;  %vm299_vm1 = vcmask 392192   ;;  %s1086_s12 = smul.u32 (%p1290_p6), 6, %s1195_s21 }
  0x28   : > { %1004 = vmatprep.mubr.msk.f32.mxu0 %vm1210_vm0, %v1209_v6  ;;  %1019 = vmatprep.mubr.msk.f32.mxu1 %vm1210_vm0, %v1209_v6  ;;  %v1347_v14 = vld [vmem:[%s268_s7] sm:$0xff]  ;;  %v936_v16 = vld [vmem:[%s1469_s1 + $0x8] sm:$0xff] }
  0x29   : > { %1146 = vset.pattern.permute.xlu0 %v1211_v8  ;;  %993 = vmatpush3.msra.mxu0 %v1321_v9  ;;  %v298_v15 = vld [vmem:[%s1469_s1] sm:$0xff]  ;;  %v938_v17 = vld [vmem:[%s1469_s1 + $0x10] sm:$0xff]  ;;  %v941_v19 = vld [vmem:[%s1470_s2 + $0x8] sm:$0xff]  ;;  %s813_s18 = sadd.s32 (%p1290_p6), %s1191_s20, %s1086_s12 }
  0x2a   : > { %765 = vperm.xlu0 %1146, %v748_v7   ;;  %1008 = vmatpush3.msra.mxu1 %v1321_v9  ;;  %v523_v18 = vld [vmem:[%s1470_s2] sm:$0xff]  ;;  %v943_v21 = vld [vmem:[%s1470_s2 + $0x10] sm:$0xff]  ;;  %s947_s27 = sshll.u32 (%p1290_p6), %s813_s18, 3 }
  0x2b   : > { %994 = vmatprep.subr.mxu0 %v1209_v6  ;;  %1009 = vmatprep.subr.mxu1 %v1209_v6  ;;  %v747_v20 = vld [vmem:[%s1471_s3] sm:$0xff]  ;;  %s815_s15 = scalar_lea.vmem (%p1290_p6), %s1473_s5, %s947_s27 }
  0x2c   : > { %995 = vmatpush3.msra.mxu0 %v1323_v10  ;;  %1010 = vmatpush3.msra.mxu1 %v1323_v10 }
  0x2d   : > { %996 = vmatprep.subr.mxu0 %v1209_v6  ;;  %1011 = vmatprep.subr.mxu1 %v1209_v6 }
  0x2e   : > { %997 = vmatpush3.msra.mxu0 %v1329_v11  ;;  %1012 = vmatpush3.msra.mxu1 %v1329_v11 }
  0x2f   : > { %998 = vmatprep.subr.mxu0 %v1209_v6  ;;  %1013 = vmatprep.subr.mxu1 %v1209_v6 }
  0x30   : > { %999 = vmatpush3.msra.mxu0 %v1335_v12  ;;  %1014 = vmatpush3.msra.mxu1 %v1335_v12 }
  0x31   : > { %1000 = vmatprep.subr.mxu0 %v1209_v6  ;;  %1015 = vmatprep.subr.mxu1 %v1209_v6 }
  0x32   : > { %1001 = vmatpush3.msra.mxu0 %v1341_v13  ;;  %1016 = vmatpush3.msra.mxu1 %v1341_v13 }
  0x33   : > { %1002 = vmatprep.subr.mxu0 %v1209_v6  ;;  %1017 = vmatprep.subr.mxu1 %v1209_v6 }
  0x34   : > { %1003 = vmatpush3.msra.mxu0 %v1347_v14  ;;  %1018 = vmatpush3.msra.mxu1 %v1347_v14 }
  0x35   : > { %1005 = vmatmul.mubr.msk.f32.vlgmr.msra.gmra.mxu0 %vm299_vm1, %v298_v15  ;;  %1022 = vmatprep.subr.mxu0 %v1209_v6 }
  0x36   : > { %1020 = vmatmul.mubr.msk.f32.vlgmr.msra.gmra.mxu1 %vm299_vm1, %v936_v16  ;;  %1023 = vmatpush3.msra.mxu0 %v1321_v9 }
  0x37   : > { %1024 = vmatprep.subr.mxu0 %v1209_v6  ;;  %1037 = vmatprep.subr.mxu1 %v1209_v6 }
  0x38   : > { %1025 = vmatpush3.msra.mxu0 %v1323_v10  ;;  %1038 = vmatpush3.msra.mxu1 %v1321_v9 }
  0x39   : > { %1026 = vmatprep.subr.mxu0 %v1209_v6  ;;  %1034 = vmatprep.mubr.msk.f32.mxu0 %vm1210_vm0, %v1209_v6 }
  0x3a   : > { %1027 = vmatpush3.msra.mxu0 %v1329_v11  ;;  %1039 = vmatprep.subr.mxu1 %v1209_v6 }
  0x3b   : > { %1028 = vmatprep.subr.mxu0 %v1209_v6  ;;  %1040 = vmatpush3.msra.mxu1 %v1323_v10 }
  0x3c   : > { %1029 = vmatpush3.msra.mxu0 %v1335_v12  ;;  %1041 = vmatprep.subr.mxu1 %v1209_v6 }
  0x3d   : > { %1030 = vmatprep.subr.mxu0 %v1209_v6  ;;  %1042 = vmatpush3.msra.mxu1 %v1329_v11 }
  0x3e   : > { %1031 = vmatpush3.msra.mxu0 %v1341_v13  ;;  %1043 = vmatprep.subr.mxu1 %v1209_v6 }
  0x3f   : > { %1032 = vmatprep.subr.mxu0 %v1209_v6  ;;  %1044 = vmatpush3.msra.mxu1 %v1335_v12 }
  0x40   : > { %1033 = vmatpush3.msra.mxu0 %v1347_v14  ;;  %1045 = vmatprep.subr.mxu1 %v1209_v6 }
  0x41   : > { %1035 = vmatmul.mubr.msk.f32.vlgmr.msra.gmra.mxu0 %vm299_vm1, %v938_v17  ;;  %1046 = vmatpush3.msra.mxu1 %v1341_v13 }
  0x42   : > { %1047 = vmatprep.subr.mxu1 %v1209_v6  ;;  %1052 = vmatprep.subr.mxu0 %v1209_v6 }
  0x43   : > { %1048 = vmatpush3.msra.mxu1 %v1347_v14  ;;  %1053 = vmatpush3.msra.mxu0 %v1321_v9 }
  0x44   : > { %1049 = vmatprep.mubr.msk.f32.mxu1 %vm1210_vm0, %v1209_v6  ;;  %1054 = vmatprep.subr.mxu0 %v1209_v6 }
  0x45   : > { %1067 = vmatprep.subr.mxu1 %v1209_v6  ;;  %1050 = vmatmul.mubr.msk.f32.vlgmr.msra.gmra.mxu1 %vm299_vm1, %v523_v18 }
  0x46   : > { %1055 = vmatpush3.msra.mxu0 %v1323_v10  ;;  %1068 = vmatpush3.msra.mxu1 %v1321_v9 }
  0x47   : > { %1056 = vmatprep.subr.mxu0 %v1209_v6  ;;  %1069 = vmatprep.subr.mxu1 %v1209_v6 }
  0x48   : > { %1057 = vmatpush3.msra.mxu0 %v1329_v11  ;;  %1070 = vmatpush3.msra.mxu1 %v1323_v10 }
  0x49   : > { %1058 = vmatprep.subr.mxu0 %v1209_v6  ;;  %1071 = vmatprep.subr.mxu1 %v1209_v6 }
  0x4a   : > { %1059 = vmatpush3.msra.mxu0 %v1335_v12  ;;  %1072 = vmatpush3.msra.mxu1 %v1329_v11 }
  0x4b   : > { %1060 = vmatprep.subr.mxu0 %v1209_v6  ;;  %1073 = vmatprep.subr.mxu1 %v1209_v6 }
  0x4c   : > { %1061 = vmatpush3.msra.mxu0 %v1341_v13  ;;  %1074 = vmatpush3.msra.mxu1 %v1335_v12 }
  0x4d   : > { %1062 = vmatprep.subr.mxu0 %v1209_v6  ;;  %1075 = vmatprep.subr.mxu1 %v1209_v6 }
  0x4e   : > { %1063 = vmatpush3.msra.mxu0 %v1347_v14  ;;  %1064 = vmatprep.mubr.msk.f32.mxu0 %vm1210_vm0, %v1209_v6 }
  0x4f   : > { %1076 = vmatpush3.msra.mxu1 %v1341_v13  ;;  %1065 = vmatmul.mubr.msk.f32.vlgmr.msra.gmra.mxu0 %vm299_vm1, %v941_v19 }
  0x50   : > { %1077 = vmatprep.subr.mxu1 %v1209_v6  ;;  %1079 = vmatprep.mubr.msk.f32.mxu1 %vm1210_vm0, %v1209_v6 }
  0x51   : > { %1078 = vmatpush3.msra.mxu1 %v1347_v14  ;;  %771 = vperm.xlu0 %1146, %v747_v20  }
  0x52   : > { %1080 = vmatmul.mubr.msk.f32.vlgmr.msra.gmra.mxu1 %vm299_vm1, %v943_v21 }
  0xa5   : > { %v766_v51 = vpop.permute.xlu0 %765 }
  0xcc   : > { %v772_v54 = vpop.permute.xlu0 %771 }
  0xf5   : > { %v369_v22 = vpop.f32.mrf.mxu0 }
  0xf6   : > { %v444_v23 = vpop.f32.mrf.mxu1  ;;  %v749_v26 = vmul.f32 %v369_v22, %v369_v22 }
  0xf7   : > { %v1006_v24 = vpop.f32.mrf.mxu0  ;;  %v750_v27 = vmul.f32 %v444_v23, %v444_v23 }
  0xf8   : > { %v1021_v25 = vpop.f32.mrf.mxu1 }
  0xf9   : > { %v751_v29 = vadd.f32 %v750_v27, %v749_v26 }
 0x101   : > { %v519_v28 = vpop.f32.mrf.mxu0 }
 0x102   : > { %v752_v30 = vmul.f32 %v519_v28, %v519_v28 }
 0x103   : > { %v1036_v31 = vpop.f32.mrf.mxu0 }
 0x104   : > { %v753_v32 = vadd.f32 %v752_v30, %v751_v29 }
 0x105   : > { %v593_v33 = vpop.f32.mrf.mxu1 }
 0x106   : > { %1147 = vrsqrt.f32 %v753_v32  ;;  %vm756_vm2 = vcmp.eq.f32.partialorder %v753_v32, inf  ;;  %v759_v41 = vand.u32 2147483648, %v753_v32  ;;  %v783_v42 = vmul.f32 %v593_v33, %v593_v33 }
 0x107   : > { %v1051_v34 = vpop.f32.mrf.mxu1  ;;  %vm758_vm3 = vcmp.eq.f32.partialorder %v753_v32, 0.0 }
 0x10f   : > { %v668_v35 = vpop.f32.mrf.mxu0 }
 0x110   : > { %v784_v43 = vmul.f32 %v668_v35, %v668_v35 }
 0x111   : > { %v1066_v36 = vpop.f32.mrf.mxu0 }
 0x112   : > { %v743_v37 = vpop.f32.mrf.mxu1  ;;  %v785_v47 = vadd.f32 %v784_v43, %v783_v42 }
 0x113   : > { %v1148_v38 = vpop.eup %1147  ;;  %v786_v48 = vmul.f32 %v743_v37, %v743_v37 }
 0x114   : > { %v755_v39 = vmul.f32 %v1148_v38, %v753_v32  ;;  %v1081_v40 = vpop.f32.mrf.mxu1 }
 0x115   : > { %v787_v49 = vadd.f32 %v786_v48, %v785_v47 }
 0x116   : > { %v757_v44 = vsel %vm756_vm2, %v753_v32, %v755_v39 }
 0x117   : > { %v760_v45 = vsel %vm758_vm3, %v759_v41, %v757_v44  ;;  %v788_v50 = vadd.f32 1e-06, %v787_v49 }
 0x118   : > { %v761_v46 = vadd.f32 1e-06, %v760_v45 }
 0x11a   : > { %1149 = vrcp.f32 %v761_v46 }
 0x11b   : > { %1151 = vrcp.f32 %v788_v50 }
 0x127   : > { %v1150_v52 = vpop.eup %1149 }
 0x128   : > { %v768_v53 = vmul.f32 %v1150_v52, %v766_v51  ;;  %v1152_v0 = vpop.eup %1151 }
 0x12a   : > { %v774_v55 = vadd.f32 %v772_v54, %v768_v53 }
 0x12c   : > { %v775_v56 = vmul.f32 %v774_v55, %v369_v22  ;;  %v776_v57 = vmul.f32 %v774_v55, %v444_v23  ;;  %v777_v58 = vmul.f32 %v774_v55, %v519_v28 }
 0x12e   : > { %v778_v59 = vmul.f32 %v775_v56, %v593_v33  ;;  %v779_v60 = vmul.f32 %v776_v57, %v668_v35  ;;  %v781_v62 = vmul.f32 %v777_v58, %v743_v37 }
 0x130   : > { %v780_v61 = vadd.f32 %v779_v60, %v778_v59 }
 0x132   : > { %v782_v63 = vadd.f32 %v781_v62, %v780_v61 }
 0x134   : > { %vm790_vm4 = vcmp.lt.f32.partialorder %v782_v63, 0.0  ;;  %v791_v1 = vmul.f32 %v1152_v0, %v782_v63 }
 0x136   : > { %v792_v2 = vsel %vm790_vm4, %v791_v1, 0.0 }
 0x137   : > { %v793_v3 = vmul.f32 0.8, %v792_v2 }
 0x139   : > { %v794_v4 = vmul.f32 %v793_v3, %v593_v33  ;;  %v796_v5 = vmul.f32 %v793_v3, %v668_v35  ;;  %v798_v6 = vmul.f32 %v793_v3, %v743_v37 }
 0x13a   : > { %811 = sbr.rel (!%p1290_p6) target bundleno = 327 (0x147), region = 82 }
 0x13b   : > { %v795_v7 = vsub.f32 %v775_v56, %v794_v4  ;;  %v797_v8 = vsub.f32 %v776_v57, %v796_v5  ;;  %v799_v9 = vsub.f32 %v777_v58, %v798_v6 }
 0x13d   : > { %800 = vst [vmem:[%s291_s11] sm:$0xff] %v795_v7  ;;  %945 = vst [vmem:[%s291_s11 + $0x8] sm:$0xff] %v797_v8 }
 0x13e   : > { %946 = vst [vmem:[%s291_s11 + $0x10] sm:$0xff] %v799_v9 }
 0x144   : > { %v848_v10 = vld [vmem:[%s291_s11] sm:$0xff]  ;;  %v850_v11 = vld [vmem:[%s291_s11 + $0x8] sm:$0xff] }
 0x145   : > { %v852_v12 = vld [vmem:[%s291_s11 + $0x10] sm:$0xff]  ;;  %849 = vst [vmem:[%s815_s15] sm:$0xff] %v848_v10  ;;  %851 = vst [vmem:[%s815_s15 + $0x10] sm:$0xff] %v850_v11 }
 0x146   : > { %853 = vst [vmem:[%s815_s15 + $0x20] sm:$0xff] %v852_v12 }
 0x147 PF: > { %s15_s24 = sadd.s32 1, %s1207_s24   ;;  %s1475_s18 = smov %s1187_s19 }
 0x148   : > { %p12_p12 = scmp.ge.s32.totalorder %s15_s24, 6   ;;  %s1476_s19 = smov %s1298_s8 }
 0x149   : > { %s1477_s20 = smov %s1199_s22  ;;  %s1478_s21 = smov %s1203_s23 }
 0x14a   : > { %s1479_s22 = smov %s1482_s25  ;;  %s1480_s23 = smov %s1486_s26 }
 0x14b   :  { %14 = sbr.rel (!%p12_p12) target bundleno = 4 (0x4), region = 157 }

// kernel: vn_std_feature.6
= control target key start
LH: loop header
LB: loop body
LE: loop exit
PB: predicated region body
PF: predicated region fallthrough
CT: control target
= control target key end

     0   :  { %s699_s12 = smov 0   ;;  %s701_s13 = smov 0   ;;  %s809_s0 = inlined_call_operand.vmem [shape: f32[2,3,8,256], index: 0, kind: input, shape index: {}]   ;;  %s810_s1 = inlined_call_operand.vmem [shape: f32[4,8], index: 1, kind: input, shape index: {}]   ;;  %s811_s2 = inlined_call_operand.vmem [shape: f32[4,1], index: 2, kind: output, shape index: {0}]   ;;  %s812_s3 = inlined_call_operand.vmem [shape: f32[4,1], index: 3, kind: output, shape index: {1}]  }
   0x1   :  { %s703_s14 = smov 0   ;;  %s705_s15 = smov 0  }
   0x2   :  { %s707_s16 = smov 0   ;;  %s709_s17 = smov 0  }
   0x3   :  { %s711_s18 = smov 0  }
   0x4 LB: > { %s23_s19 = sadd.s32 1, %s666_s16  ;;  %s26_s20 = sadd.s32 1, %s670_s17  ;;  %s674_s18 = sphi %s711_s18, %s14_s18   ;;  %s670_s17 = sphi %s709_s17, %s818_s17   ;;  %s666_s16 = sphi %s707_s16, %s817_s16   ;;  %s662_s15 = sphi %s705_s15, %s816_s15   ;;  %s658_s14 = sphi %s703_s14, %s815_s14   ;;  %s654_s13 = sphi %s701_s13, %s814_s13   ;;  %s650_s12 = sphi %s699_s12, %s813_s12  }
   0x5   : > { %p24_p0 = scmp.ge.s32.totalorder %s23_s19, 2  ;;  %p42_p1 = scmp.ne.s32.totalorder %s654_s13, %s650_s12 }
   0x6   : > { %p43_p2 = scmp.eq.s32.totalorder %s674_s18, 0  ;;  %s35_s24 = sadd.s32 1, %s654_s13 }
   0x7   : > { %s820_s19 = smov (%p24_p0, %s23_s19), 0  ;;  %s822_s20 = smov (!%p24_p0, %s26_s20), %s670_s17 }
   0x8   : > { %p44_p3 = por %p43_p2, %p42_p1  ;;  %p28_p4 = scmp.ge.s32.totalorder %s822_s20, 2 }
   0x9   : > { %s31_s21 = ssub.s32 %s666_s16, %s820_s19  ;;  %p525_p6 = scmp.ge.s32.totalorder %s674_s18, 4 }
   0xa   : > { %s824_s20 = smov (%p28_p4, %s822_s20), 0 }
   0xb   : > { %s30_s22 = ssub.s32 %s670_s17, %s824_s20  ;;  %134 = sbr.rel (%p525_p6) target bundleno = 25 (0x19), region = 20 }
   0xc   : > { %s32_s23 = sor.u32 %s31_s21, %s30_s22 }
   0xd   : > { %p33_p5 = scmp.eq.s32.totalorder %s32_s23, 0 }
   0xf   : > { %s750_s25 = scalar_select %p33_p5, %s654_s13, %s35_s24  }
  0x10   : > { %137 = sbr.rel (!%p44_p3) target bundleno = 25 (0x19), region = 24  ;;  %s139_s26 = sand.u32 (%p44_p3), 1, %s654_s13  }
  0x11   : > { %s557_s27 = smul.u32 (%p44_p3), 6, %s670_s17 }
  0x12   : > { %s556_s28 = smul.u32 (%p44_p3), 24, %s139_s26 }
  0x13   : > { %s143_s29 = sadd.s32 (%p44_p3), %s666_s16, %s557_s27 }
  0x14   : > { %s526_s30 = sshll.u32 (%p44_p3), %s143_s29, 3  ;;  %s141_s7 = scalar_lea.vmem (%p44_p3), [#allocation2], %s556_s28 }
  0x15   : > { %s145_s6 = scalar_lea.vmem %s809_s0, %s526_s30 }
  0x16   : > { %v178_v0 = vld [vmem:[%s145_s6] sm:$0xff]  ;;  %v180_v1 = vld [vmem:[%s145_s6 + $0x10] sm:$0xff] }
  0x17   : > { %v182_v2 = vld [vmem:[%s145_s6 + $0x20] sm:$0xff]  ;;  %179 = vst [vmem:[%s141_s7] sm:$0xff] %v178_v0  ;;  %181 = vst [vmem:[%s141_s7 + $0x8] sm:$0xff] %v180_v1 }
  0x18   : > { %183 = vst [vmem:[%s141_s7 + $0x10] sm:$0xff] %v182_v2 }
  0x19 PF: > { %p527_p7 = scmp.ge.s32.totalorder %s674_s18, 1  ;;  %p188_p8 = scmp.lt.s32.totalorder %s674_s18, 5 }
  0x1b   : > { %p189_p9 = pnand %p527_p7, %p188_p8 }
  0x1c   : > { %s195_s8 = sand.u32 (!%p189_p9), 1, %s650_s12   ;;  %p213_p10 = scmp.eq.s32.totalorder (!%p189_p9), %s662_s15, 0 }
  0x1d   : > { %192 = sbr.rel (%p189_p9) target bundleno = 411 (0x19b), region = 62  ;;  %p214_p11 = scmp.eq.s32.totalorder (!%p189_p9), %s658_s14, 0 }
  0x1e   : > { %s558_s9 = smul.u32 (!%p189_p9), 24, %s195_s8 }
  0x1f   : > { %p215_p12 = pnand (!%p189_p9), %p214_p11, %p213_p10 }
  0x20   : > { %s197_s10 = scalar_lea.vmem (!%p189_p9), [#allocation2], %s558_s9 }
  0x22   : > { %218 = sbr.rel (%p215_p12) target bundleno = 41 (0x29), region = 70 }
  0x27   : > { %vm219_vm0 = vcmask 3072   ;;  %v676_v3 = vmov 0.0  }
  0x28   : > { %220 = vst.msk [vmem:[%s811_s2] sm:$0xf] %vm219_vm0, %v676_v3  ;;  %221 = vst.msk [vmem:[%s812_s3] sm:$0xf] %vm219_vm0, %v676_v3 }
  0x29 PF: > { %v223_v4 = vld [vmem:[%s197_s10] sm:$0xff]  ;;  %vm224_vm1 = vcmask 64512   ;;  %v677_v6 = vmov 0.0   ;;  %vm678_vm2 = vmmov 0   ;;  %v529_v7 = vld [vmem:[%s197_s10 + $0x8] sm:$0xff]  ;;  %v531_v8 = vld [vmem:[%s197_s10 + $0x10] sm:$0xff] }
  0x2a   : > { %v222_v5 = vld [vmem:[%s810_s1] sm:$0xf]  ;;  %541 = vmatprep.subr.mxu0 %v677_v6  ;;  %543 = vmatprep.mubr.msk.f32.mxu0 %vm678_vm2, %v677_v6  ;;  %vm456_vm5 = vcmask 1043456   ;;  %vm461_vm6 = vcmask 3072  }
  0x2b   : > { %542 = vmatpush3.msra.mxu0 %v223_v4  ;;  %546 = vmatprep.subr.mxu1 %v677_v6 }
  0x2c   : > { %544 = vmatmul.mubr.msk.f32.vlgmr.msra.gmra.mxu0 %vm224_vm1, %v222_v5  ;;  %547 = vmatpush3.msra.mxu1 %v529_v7 }
  0x2d   : > { %548 = vmatprep.mubr.msk.f32.mxu1 %vm678_vm2, %v677_v6  ;;  %551 = vmatprep.subr.mxu0 %v677_v6 }
  0x2e   : > { %549 = vmatmul.mubr.msk.f32.vlgmr.msra.gmra.mxu1 %vm224_vm1, %v222_v5  ;;  %552 = vmatpush3.msra.mxu0 %v531_v8 }
  0x2f   : > { %553 = vmatprep.mubr.msk.f32.mxu0 %vm678_vm2, %v677_v6  ;;  %v455_v29 = vld [vmem:[%s811_s2] sm:$0xf] }
  0x30   : > { %554 = vmatmul.mubr.msk.f32.vlgmr.msra.gmra.mxu0 %vm224_vm1, %v222_v5  ;;  %v463_v32 = vld [vmem:[%s812_s3] sm:$0xf] }
  0xec   : > { %v294_v9 = vpop.f32.mrf.mxu0 }
  0xed   : > { %v442_v10 = vmul.f32 %v294_v9, %v294_v9 }
  0xee   : > { %v366_v11 = vpop.f32.mrf.mxu1  ;;  %v545_v12 = vpop.f32.mrf.mxu0 }
  0xef   : > { %v443_v13 = vmul.f32 %v366_v11, %v366_v11 }
  0xf0   : > { %v550_v14 = vpop.f32.mrf.mxu1  ;;  %v438_v15 = vpop.f32.mrf.mxu0 }
  0xf1   : > { %v444_v16 = vadd.f32 %v443_v13, %v442_v10  ;;  %v445_v17 = vmul.f32 %v438_v15, %v438_v15 }
  0xf2   : > { %v555_v18 = vpop.f32.mrf.mxu0 }
  0xf3   : > { %v446_v19 = vadd.f32 %v445_v17, %v444_v16 }
  0xf5   : > { %618 = vrsqrt.f32 %v446_v19  ;;  %vm449_vm3 = vcmp.eq.f32.partialorder %v446_v19, inf  ;;  %v452_v22 = vand.u32 2147483648, %v446_v19  ;;  %vm451_vm4 = vcmp.eq.f32.partialorder %v446_v19, 0.0 }
 0x102   : > { %v619_v20 = vpop.eup %618 }
 0x103   : > { %v448_v21 = vmul.f32 %v619_v20, %v446_v19 }
 0x105   : > { %v450_v23 = vsel %vm449_vm3, %v446_v19, %v448_v21 }
 0x106   : > { %v453_v24 = vsel %vm451_vm4, %v452_v22, %v450_v23 }
 0x107   : > { %v454_v25 = vadd.f32 1e-06, %v453_v24 }
 0x109   : > { %v457_v26 = vsel %vm456_vm5, %v454_v25, 0.0  ;;  %v464_v27 = vmul.f32 %v454_v25, %v454_v25 }
 0x10a   : > { %458 = vadd.xlane.f32.xlu0 %v457_v26 }
 0x10b   : > { %v465_v28 = vsel %vm456_vm5, %v464_v27, 0.0 }
 0x10e   : > { %466 = vadd.xlane.f32.xlu0 %v465_v28 }
 0x193   : > { %v459_v30 = vpop.xlane.xlu0 %458 }
 0x194   : > { %v460_v31 = vadd.f32 %v459_v30, %v455_v29 }
 0x196   : > { %462 = vst.msk [vmem:[%s811_s2] sm:$0xf] %vm461_vm6, %v460_v31 }
 0x197   : > { %v467_v33 = vpop.xlane.xlu0 %466 }
 0x198   : > { %v468_v34 = vadd.f32 %v467_v33, %v463_v32 }
 0x19a   : > { %469 = vst.msk [vmem:[%s812_s3] sm:$0xf] %vm461_vm6, %v468_v34 }
 0x19b PF: > { %s14_s18 = sadd.s32 1, %s674_s18   ;;  %s813_s12 = smov %s654_s13 }
 0x19c   : > { %p11_p13 = scmp.ge.s32.totalorder %s14_s18, 6   ;;  %s814_s13 = smov %s750_s25 }
 0x19d   : > { %s815_s14 = smov %s666_s16  ;;  %s816_s15 = smov %s670_s17 }
 0x19e   : > { %s817_s16 = smov %s820_s19  ;;  %s818_s17 = smov %s824_s20 }
 0x19f   :  { %13 = sbr.rel (!%p11_p13) target bundleno = 4 (0x4), region = 111 }

// kernel: vn_std_feature.7
= control target key start
LH: loop header
LB: loop body
LE: loop exit
PB: predicated region body
PF: predicated region fallthrough
CT: control target
= control target key end

     0   :  { %s2613_s13 = smov 0   ;;  %s2615_s14 = smov 0   ;;  %s2894_s0 = inlined_call_operand.vmem [shape: f32[2,3,8,256], index: 0, kind: input, shape index: {}]   ;;  %s2895_s1 = inlined_call_operand.vmem [shape: f32[2,48,256], index: 1, kind: input, shape index: {}]   ;;  %s2896_s2 = inlined_call_operand.vmem [shape: f32[4,8], index: 2, kind: input, shape index: {}]   ;;  %s2897_s3 = inlined_call_operand.vmem [shape: f32[4,8], index: 3, kind: input, shape index: {}]   ;;  %s2898_s4 = inlined_call_operand.vmem [shape: f32[4,1], index: 4, kind: input, shape index: {}]   ;;  %s2899_s5 = inlined_call_operand.vmem [shape: f32[4,1], index: 5, kind: input, shape index: {}]   ;;  %s2900_s6 = inlined_call_operand.vmem [shape: f32[3,4], index: 6, kind: input, shape index: {}]   ;;  %s2901_s7 = inlined_call_operand.vmem [shape: f32[3,16,48], index: 7, kind: input, shape index: {}]   ;;  %s2902_s8 = inlined_call_operand.vmem [shape: f32[3,48,16], index: 8, kind: input, shape index: {}]   ;;  %s2903_s9 = inlined_call_operand.vmem [shape: f32[2,48,256], index: 9, kind: output, shape index: {0}]   ;;  %s2904_s10 = inlined_call_operand.vmem [shape: f32[2,3,3,256], index: 10, kind: output, shape index: {1}]  }
   0x1   :  { %s2617_s15 = smov 0   ;;  %s2619_s16 = smov 0  }
   0x2   :  { %s2621_s17 = smov 0   ;;  %s2623_s18 = smov 0  }
   0x3   :  { %s2625_s19 = smov 0  }
   0x4 LB: > { %s30_s20 = sadd.s32 1, %s2545_s17  ;;  %s33_s21 = sadd.s32 1, %s2549_s18  ;;  %s2553_s19 = sphi %s2625_s19, %s21_s19   ;;  %s2549_s18 = sphi %s2623_s18, %s2918_s18   ;;  %s2545_s17 = sphi %s2621_s17, %s2917_s17   ;;  %s2541_s16 = sphi %s2619_s16, %s2916_s16   ;;  %s2537_s15 = sphi %s2617_s15, %s2915_s15   ;;  %s2533_s14 = sphi %s2615_s14, %s2914_s14   ;;  %s2529_s13 = sphi %s2613_s13, %s2913_s13  }
   0x5   : > { %p31_p0 = scmp.ge.s32.totalorder %s30_s20, 2  ;;  %s2162_s22 = sadd.s32 4294967295, %s2553_s19  }
   0x6   : > { %p49_p1 = scmp.ne.s32.totalorder %s2533_s14, %s2529_s13  ;;  %p50_p2 = scmp.eq.s32.totalorder %s2553_s19, 0 }
   0x7   : > { %s2920_s20 = smov (%p31_p0, %s30_s20), 0  ;;  %s2922_s21 = smov (!%p31_p0, %s33_s21), %s2549_s18 }
   0x8   : > { %2907 = sst [smem:[#allocation6_spill]] %s2920_s20  ;;  %p35_p3 = scmp.ge.s32.totalorder %s2922_s21, 2 }
   0x9   : > { %p256_p4 = scmp.eq.s32.totalorder %s2162_s22, 3  ;;  %s38_s23 = ssub.s32 %s2545_s17, %s2920_s20 }
   0xa   : > { %p2659_p5 = por %p50_p2, %p49_p1  ;;  %s2924_s21 = smov (%p35_p3, %s2922_s21), 0 }
   0xb   : > { %2909 = sst [smem:[#allocation7_spill]] %s2924_s21  ;;  %p2665_p6 = por %p256_p4, %p49_p1 }
   0xc   : > { %s37_s26 = ssub.s32 %s2549_s18, %s2924_s21  ;;  %s42_s28 = sadd.s32 1, %s2533_s14 }
   0xd   : > { %s39_s27 = sor.u32 %s38_s23, %s37_s26  ;;  %p2165_p8 = scmp.ge.s32.totalorder %s2553_s19, 4 }
   0xe   : > { %p40_p7 = scmp.eq.s32.totalorder %s39_s27, 0 }
   0xf   : > { %327 = sbr.rel (%p2165_p8) target bundleno = 39 (0x27), region = 44 }
  0x10   : > { %s2673_s29 = scalar_select %p40_p7, %s2533_s14, %s42_s28  }
  0x14   : > { %330 = sbr.rel (!%p2659_p5) target bundleno = 29 (0x1d), region = 48  ;;  %s332_s30 = sand.u32 (%p2659_p5), 1, %s2533_s14  }
  0x15   : > { %s2425_s11 = smul.u32 (%p2659_p5), 6, %s2549_s18 }
  0x16   : > { %s2424_s12 = smul.u32 (%p2659_p5), 24, %s332_s30 }
  0x17   : > { %s336_s22 = sadd.s32 (%p2659_p5), %s2545_s17, %s2425_s11 }
  0x18   : > { %s2166_s20 = sshll.u32 (%p2659_p5), %s336_s22, 3  ;;  %s334_s27 = scalar_lea.vmem (%p2659_p5), [#allocation2], %s2424_s12 }
  0x19   : > { %s338_s26 = scalar_lea.vmem %s2894_s0, %s2166_s20 }
  0x1a   : > { %v371_v0 = vld [vmem:[%s338_s26] sm:$0xff]  ;;  %v373_v1 = vld [vmem:[%s338_s26 + $0x10] sm:$0xff] }
  0x1b   : > { %v375_v2 = vld [vmem:[%s338_s26 + $0x20] sm:$0xff]  ;;  %372 = vst [vmem:[%s334_s27] sm:$0xff] %v371_v0  ;;  %374 = vst [vmem:[%s334_s27 + $0x8] sm:$0xff] %v373_v1 }
  0x1c   : > { %376 = vst [vmem:[%s334_s27 + $0x10] sm:$0xff] %v375_v2 }
  0x1d PF: > { %382 = sbr.rel (!%p2659_p5) target bundleno = 39 (0x27), region = 86  ;;  %s384_s28 = sand.u32 (%p2659_p5), 1, %s2533_s14  }
  0x1e   : > { %s2427_s30 = smul.u32 (%p2659_p5), 12, %s2549_s18 }
  0x1f   : > { %s2426_s11 = smul.u32 (%p2659_p5), 48, %s384_s28 }
  0x20   : > { %s388_s22 = sadd.s32 (%p2659_p5), %s2545_s17, %s2427_s30 }
  0x21   : > { %s2167_s21 = sshll.u32 (%p2659_p5), %s388_s22, 3  ;;  %s386_s12 = scalar_lea.vmem (%p2659_p5), [#allocation3], %s2426_s11 }
  0x22   : > { %s390_s26 = scalar_lea.vmem %s2895_s1, %s2167_s21 }
  0x23   : > { %v429_v3 = vld [vmem:[%s390_s26] sm:$0xff]  ;;  %v431_v4 = vld [vmem:[%s390_s26 + $0x10] sm:$0xff] }
  0x24   : > { %v433_v5 = vld [vmem:[%s390_s26 + $0x20] sm:$0xff]  ;;  %430 = vst [vmem:[%s386_s12] sm:$0xff] %v429_v3  ;;  %432 = vst [vmem:[%s386_s12 + $0x8] sm:$0xff] %v431_v4  ;;  %v435_v6 = vld [vmem:[%s390_s26 + $0x30] sm:$0xff] }
  0x25   : > { %434 = vst [vmem:[%s386_s12 + $0x10] sm:$0xff] %v433_v5  ;;  %v437_v7 = vld [vmem:[%s390_s26 + $0x40] sm:$0xff]  ;;  %v439_v8 = vld [vmem:[%s390_s26 + $0x50] sm:$0xff]  ;;  %436 = vst [vmem:[%s386_s12 + $0x18] sm:$0xff] %v435_v6 }
  0x26   : > { %438 = vst [vmem:[%s386_s12 + $0x20] sm:$0xff] %v437_v7  ;;  %440 = vst [vmem:[%s386_s12 + $0x28] sm:$0xff] %v439_v8 }
  0x27 PF: > { %p2168_p9 = scmp.ge.s32.totalorder %s2553_s19, 1  ;;  %p445_p10 = scmp.lt.s32.totalorder %s2553_s19, 5 }
  0x29   : > { %p446_p11 = pnand %p2168_p9, %p445_p10 }
  0x2a   : > { %s2695_s24 = sand.u32 (!%p446_p11), 1, %s2529_s13  }
  0x2b   : > { %449 = sbr.rel (%p446_p11) target bundleno = 773 (0x305), region = 124 }
  0x2c   : > { %s2428_s27 = smul.u32 (!%p446_p11), 24, %s2695_s24 }
  0x2d   : > { %s2429_s12 = smul.u32 (!%p446_p11), 48, %s2695_s24 }
  0x2e   : > { %s454_s22 = scalar_lea.vmem (!%p446_p11), [#allocation2], %s2428_s27  ;;  %s2430_s26 = smul.u32 (!%p446_p11), 12, %s2695_s24 }
  0x2f   : > { %s461_s30 = scalar_lea.vmem (!%p446_p11), [#allocation3], %s2429_s12  ;;  %s496_s21 = scalar_lea.vmem (!%p446_p11), [#allocation4], %s2429_s12 }
  0x30   : > { %v2555_v9 = vmov 0.0   ;;  %v938_v10 = vld [vmem:[%s2899_s5] sm:$0xf]  ;;  %vm2556_vm0 = vmmov 0   ;;  %vm510_vm1 = vcmask 64512   ;;  %v2557_v12 = vmov 0  }
  0x31   : > { %2295 = vmatprep.subr.mxu0 %v2555_v9  ;;  %2300 = vmatprep.subr.mxu1 %v2555_v9  ;;  %v503_v11 = vld [vmem:[%s2896_s2] sm:$0xf]  ;;  %v2170_v15 = vld [vmem:[%s454_s22 + $0x10] sm:$0xff]  ;;  %vm995_vm5 = vcmask 1043456   ;;  %vm991_vm6 = vcmask 31744   ;;  %vm1228_vm7 = vcmask 392192  }
  0x32   : > { %2297 = vmatprep.mubr.msk.f32.mxu0 %vm2556_vm0, %v2555_v9  ;;  %2302 = vmatprep.mubr.msk.f32.mxu1 %vm2556_vm0, %v2555_v9  ;;  %v505_v13 = vld [vmem:[%s454_s22] sm:$0xff]  ;;  %v2169_v14 = vld [vmem:[%s454_s22 + $0x8] sm:$0xff]  ;;  %v1225_v6 = vld [vmem:[%s461_s30 + $0x28] sm:$0xff]  ;;  %vm1535_vm8 = vcmask 130048   ;;  %s2785_s27 = scalar_lea.vmem [#allocation5], %s2430_s26  ;;  %s2431_s24 = smul.u32 (%p2665_p6), 12, %s2541_s16 }
  0x33   : > { %2492 = vset.pattern.permute.xlu0 %v2557_v12  ;;  %2296 = vmatpush3.msra.mxu0 %v505_v13  ;;  %v504_v16 = vld [vmem:[%s2897_s3] sm:$0xf]  ;;  %v1221_v12 = vld [vmem:[%s461_s30 + $0x8] sm:$0xff] }
  0x34   : > { %955 = vperm.xlu0 %2492, %v938_v10   ;;  %2301 = vmatpush3.msra.mxu1 %v2169_v14  ;;  %v937_v17 = vld [vmem:[%s2898_s4] sm:$0xf]  ;;  %v1223_v10 = vld [vmem:[%s461_s30 + $0x18] sm:$0xff]  ;;  %s1928_s12 = sadd.s32 (%p2665_p6), %s2537_s15, %s2431_s24 }
  0x35   : > { %2298 = vmatmul.mubr.msk.f32.vlgmr.msra.gmra.mxu0 %vm510_vm1, %v503_v11  ;;  %2303 = vmatmul.mubr.msk.f32.vlgmr.msra.gmra.mxu1 %vm510_vm1, %v503_v11  ;;  %v990_v5 = vld [vmem:[%s2900_s6] sm:$0x7]  ;;  %s2225_s20 = sshll.u32 (%p2665_p6), %s1928_s12, 3 }
  0x36   : > { %2305 = vmatprep.subr.mxu0 %v2555_v9  ;;  %2307 = vmatprep.mubr.msk.f32.mxu0 %vm2556_vm0, %v2555_v9  ;;  %v1224_v8 = vld [vmem:[%s461_s30 + $0x20] sm:$0xff]  ;;  %s1930_s28 = scalar_lea.vmem (%p2665_p6), %s2903_s9, %s2225_s20 }
  0x37   : > { %2306 = vmatpush3.msra.mxu0 %v2170_v15  ;;  %2310 = vmatprep.subr.mxu1 %v2555_v9 }
  0x38   : > { %2311 = vmatpush3.msra.mxu1 %v505_v13  ;;  %2312 = vmatprep.mubr.msk.f32.mxu1 %vm2556_vm0, %v2555_v9  ;;  %v1220_v13 = vld [vmem:[%s461_s30] sm:$0xff] }
  0x39   : > { %2308 = vmatmul.mubr.msk.f32.vlgmr.msra.gmra.mxu0 %vm510_vm1, %v503_v11  ;;  %2313 = vmatmul.mubr.msk.f32.vlgmr.msra.gmra.mxu1 %vm510_vm1, %v504_v16  ;;  %v1222_v11 = vld [vmem:[%s461_s30 + $0x10] sm:$0xff] }
  0x3a   : > { %2315 = vmatprep.subr.mxu0 %v2555_v9  ;;  %2317 = vmatprep.mubr.msk.f32.mxu0 %vm2556_vm0, %v2555_v9 }
  0x3b   : > { %2316 = vmatpush3.msra.mxu0 %v2169_v14  ;;  %2320 = vmatprep.subr.mxu1 %v2555_v9  ;;  %v1227_v14 = vld [vmem:[%s2901_s7 + $0x8] sm:$0xff] }
  0x3c   : > { %2321 = vmatpush3.msra.mxu1 %v2170_v15  ;;  %2322 = vmatprep.mubr.msk.f32.mxu1 %vm2556_vm0, %v2555_v9  ;;  %v2187_v15 = vld [vmem:[%s2901_s7 + $0x10] sm:$0xff] }
  0x3d   : > { %2318 = vmatmul.mubr.msk.f32.vlgmr.msra.gmra.mxu0 %vm510_vm1, %v504_v16  ;;  %2323 = vmatmul.mubr.msk.f32.vlgmr.msra.gmra.mxu1 %vm510_vm1, %v504_v16  ;;  %v2188_v16 = vld [vmem:[%s2901_s7 + $0x18] sm:$0xff] }
  0x3e   : > { %961 = vperm.xlu0 %2492, %v937_v17   ;;  %2325 = vmatprep.subr.mxu0 %v2555_v9  ;;  %v2191_v17 = vld [vmem:[%s2901_s7 + $0x20] sm:$0xff] }
  0x3f   : > { %2330 = vmatprep.subr.mxu1 %v2555_v9  ;;  %2327 = vmatprep.mubr.msk.f32.mxu0 %vm2556_vm0, %v2555_v9 }
  0x40   : > { %2332 = vmatprep.mubr.msk.f32.mxu1 %vm2556_vm0, %v2555_v9 }
  0xaf   : > { %v956_v47 = vpop.permute.xlu0 %955 }
  0xb9   : > { %v962_v50 = vpop.permute.xlu0 %961 }
  0xf5   : > { %v580_v18 = vpop.f32.mrf.mxu0  ;;  %v650_v19 = vpop.f32.mrf.mxu1 }
  0xf6   : > { %v939_v20 = vmul.f32 %v580_v18, %v580_v18  ;;  %v940_v21 = vmul.f32 %v650_v19, %v650_v19 }
  0xf7   : > { %v2299_v22 = vpop.f32.mrf.mxu0  ;;  %v2304_v23 = vpop.f32.mrf.mxu1 }
  0xf8   : > { %v941_v26 = vadd.f32 %v940_v21, %v939_v20  ;;  %v1500_v20 = vld [vmem:[%s2902_s8] sm:$0xff] }
  0xf9   : > { %v720_v24 = vpop.f32.mrf.mxu0  ;;  %v793_v25 = vpop.f32.mrf.mxu1 }
  0xfa   : > { %v942_v27 = vmul.f32 %v720_v24, %v720_v24  ;;  %v973_v38 = vmul.f32 %v793_v25, %v793_v25 }
  0xfb   : > { %v2309_v28 = vpop.f32.mrf.mxu0  ;;  %v2314_v29 = vpop.f32.mrf.mxu1 }
  0xfc   : > { %v943_v30 = vadd.f32 %v942_v27, %v941_v26  ;;  %v1478_v27 = vlaneseq }
  0xfd   : > { %v863_v31 = vpop.f32.mrf.mxu0  ;;  %v933_v32 = vpop.f32.mrf.mxu1 }
  0xfe   : > { %2493 = vrsqrt.f32 %v943_v30  ;;  %vm946_vm2 = vcmp.eq.f32.partialorder %v943_v30, inf  ;;  %v949_v37 = vand.u32 2147483648, %v943_v30  ;;  %v974_v39 = vmul.f32 %v863_v31, %v863_v31 }
  0xff   : > { %v2319_v33 = vpop.f32.mrf.mxu0  ;;  %v2324_v34 = vpop.f32.mrf.mxu1  ;;  %vm948_vm3 = vcmp.eq.f32.partialorder %v943_v30, 0.0  ;;  %v976_v44 = vmul.f32 %v933_v32, %v933_v32  ;;  %v1479_v28 = vshrl.u32 %v1478_v27, 7  ;;  %v2217_v27 = vld [vmem:[%s2902_s8 + $0x80] sm:$0xff] }
 0x100   : > { %v975_v43 = vadd.f32 %v974_v39, %v973_v38 }
 0x101   : > { %v1508_v29 = vsub.s32 1, %v1479_v28 }
 0x102   : > { %v977_v45 = vadd.f32 %v976_v44, %v975_v43 }
 0x104   : > { %v978_v46 = vadd.f32 1e-06, %v977_v45 }
 0x10b   : > { %v2494_v35 = vpop.eup %2493 }
 0x10c   : > { %v945_v36 = vmul.f32 %v2494_v35, %v943_v30  ;;  %v1764_v35 = vsub.s32 2, %v1479_v28 }
 0x10e   : > { %v947_v40 = vsel %vm946_vm2, %v943_v30, %v945_v36 }
 0x10f   : > { %v950_v41 = vsel %vm948_vm3, %v949_v37, %v947_v40 }
 0x110   : > { %v951_v42 = vadd.f32 1e-06, %v950_v41 }
 0x112   : > { %2495 = vrcp.f32 %v951_v42 }
 0x113   : > { %2497 = vrcp.f32 %v978_v46 }
 0x11f   : > { %v2496_v48 = vpop.eup %2495 }
 0x120   : > { %v958_v49 = vmul.f32 %v2496_v48, %v956_v47  ;;  %v2498_v60 = vpop.eup %2497 }
 0x122   : > { %v964_v51 = vadd.f32 %v962_v50, %v958_v49 }
 0x124   : > { %v965_v52 = vmul.f32 %v964_v51, %v580_v18  ;;  %v966_v53 = vmul.f32 %v964_v51, %v650_v19  ;;  %v967_v54 = vmul.f32 %v964_v51, %v720_v24  ;;  %v2192_v18 = vld [vmem:[%s2901_s7 + $0x28] sm:$0xff]  ;;  %v2195_v19 = vld [vmem:[%s2902_s8 + $0x30] sm:$0xff] }
 0x126   : > { %v968_v55 = vmul.f32 %v965_v52, %v793_v25  ;;  %v969_v56 = vmul.f32 %v966_v53, %v863_v31  ;;  %v971_v58 = vmul.f32 %v967_v54, %v933_v32 }
 0x128   : > { %v970_v57 = vadd.f32 %v969_v56, %v968_v55 }
 0x12a   : > { %v972_v59 = vadd.f32 %v971_v58, %v970_v57 }
 0x12c   : > { %vm980_vm4 = vcmp.lt.f32.partialorder %v972_v59, 0.0  ;;  %v981_v61 = vmul.f32 %v2498_v60, %v972_v59 }
 0x12e   : > { %v982_v62 = vsel %vm980_vm4, %v981_v61, 0.0 }
 0x12f   : > { %v983_v63 = vmul.f32 0.8, %v982_v62 }
 0x131   : > { %v984_v0 = vmul.f32 %v983_v63, %v793_v25  ;;  %v986_v1 = vmul.f32 %v983_v63, %v863_v31  ;;  %v988_v2 = vmul.f32 %v983_v63, %v933_v32  ;;  %v1480_v31 = vsub.s32 0, %v1479_v28  ;;  %v2218_v28 = vld [vmem:[%s2902_s8 + $0x88] sm:$0xff] }
 0x133   : > { %v985_v3 = vsub.f32 %v965_v52, %v984_v0  ;;  %v987_v4 = vsub.f32 %v966_v53, %v986_v1  ;;  %v989_v7 = vsub.f32 %v967_v54, %v988_v2 }
 0x135   : > { %2326 = vmatpush3.msk.msra.mxu0 %vm995_vm5, %v985_v3  ;;  %2331 = vmatpush3.msk.msra.mxu1 %vm995_vm5, %v987_v4 }
 0x136   : > { %2328 = vmatmul.mubr.msk.f32.vlgmr.msra.gmra.mxu0 %vm991_vm6, %v990_v5  ;;  %2333 = vmatmul.mubr.msk.f32.vlgmr.msra.gmra.mxu1 %vm991_vm6, %v990_v5 }
 0x137   : > { %2335 = vmatprep.subr.mxu0 %v2555_v9  ;;  %2340 = vmatprep.subr.mxu1 %v1225_v6 }
 0x138   : > { %2336 = vmatpush3.msk.msra.mxu0 %vm995_vm5, %v989_v7  ;;  %2341 = vmatpush3.msra.mxu1 %v1225_v6 }
 0x139   : > { %2342 = vmatprep.subr.mxu1 %v1224_v8  ;;  %2337 = vmatprep.mubr.msk.f32.mxu0 %vm2556_vm0, %v2555_v9  ;;  %v1226_v9 = vld [vmem:[%s2901_s7] sm:$0xff] }
 0x13a   : > { %2343 = vmatpush3.msra.mxu1 %v1224_v8  ;;  %2355 = vmatprep.subr.mxu0 %v1225_v6 }
 0x13b   : > { %2338 = vmatmul.mubr.msk.f32.vlgmr.msra.gmra.mxu0 %vm991_vm6, %v990_v5  ;;  %2344 = vmatprep.subr.mxu1 %v1223_v10 }
 0x13c   : > { %2356 = vmatpush3.msra.mxu0 %v1225_v6  ;;  %2345 = vmatpush3.msra.mxu1 %v1223_v10 }
 0x13d   : > { %2357 = vmatprep.subr.mxu0 %v1224_v8  ;;  %2346 = vmatprep.subr.mxu1 %v1222_v11 }
 0x13e   : > { %2358 = vmatpush3.msra.mxu0 %v1224_v8  ;;  %2347 = vmatpush3.msra.mxu1 %v1222_v11 }
 0x13f   : > { %2359 = vmatprep.subr.mxu0 %v1223_v10  ;;  %2348 = vmatprep.subr.mxu1 %v1221_v12 }
 0x140   : > { %2360 = vmatpush3.msra.mxu0 %v1223_v10  ;;  %2349 = vmatpush3.msra.mxu1 %v1221_v12 }
 0x141   : > { %2361 = vmatprep.subr.mxu0 %v1222_v11  ;;  %2350 = vmatprep.subr.mxu1 %v1220_v13 }
 0x142   : > { %2362 = vmatpush3.msra.mxu0 %v1222_v11  ;;  %2351 = vmatpush3.msra.mxu1 %v1220_v13 }
 0x143   : > { %2352 = vmatprep.mubr.msk.f32.mxu1 %vm1228_vm7, %v1226_v9  ;;  %2363 = vmatprep.subr.mxu0 %v1221_v12 }
 0x144   : > { %2353 = vmatmul.mubr.msk.f32.vlgmr.msra.gmra.mxu1 %vm1228_vm7, %v1227_v14  ;;  %2364 = vmatpush3.msra.mxu0 %v1221_v12  ;;  %v2197_v14 = vld [vmem:[%s2902_s8 + $0x40] sm:$0xff] }
 0x145   : > { %2370 = vmatprep.subr.mxu1 %v1225_v6  ;;  %2365 = vmatprep.subr.mxu0 %v1220_v13 }
 0x146   : > { %2371 = vmatpush3.msra.mxu1 %v1225_v6  ;;  %2366 = vmatpush3.msra.mxu0 %v1220_v13 }
 0x147   : > { %2367 = vmatprep.mubr.msk.f32.mxu0 %vm1228_vm7, %v2187_v15  ;;  %2372 = vmatprep.subr.mxu1 %v1224_v8  ;;  %v1502_v15 = vld [vmem:[%s2902_s8 + $0x10] sm:$0xff] }
 0x148   : > { %2368 = vmatmul.mubr.msk.f32.vlgmr.msra.gmra.mxu0 %vm1228_vm7, %v2188_v16  ;;  %2373 = vmatpush3.msra.mxu1 %v1224_v8 }
 0x149   : > { %2374 = vmatprep.subr.mxu1 %v1223_v10  ;;  %2382 = vmatprep.mubr.msk.f32.mxu1 %vm1228_vm7, %v2191_v17  ;;  %v2198_v17 = vld [vmem:[%s2902_s8 + $0x48] sm:$0xff] }
 0x14a   : > { %2375 = vmatpush3.msra.mxu1 %v1223_v10  ;;  %2389 = vmatprep.mubr.msk.f32.mxu0 %vm1535_vm8, %v2195_v19  ;;  %v2199_v19 = vld [vmem:[%s2902_s8 + $0x50] sm:$0xff] }
 0x14b   : > { %2376 = vmatprep.subr.mxu1 %v1222_v11 }
 0x14c   : > { %2377 = vmatpush3.msra.mxu1 %v1222_v11  ;;  %v2196_v11 = vld [vmem:[%s2902_s8 + $0x38] sm:$0xff] }
 0x14d   : > { %2378 = vmatprep.subr.mxu1 %v1221_v12 }
 0x14e   : > { %2379 = vmatpush3.msra.mxu1 %v1221_v12  ;;  %v1501_v12 = vld [vmem:[%s2902_s8 + $0x8] sm:$0xff] }
 0x14f   : > { %2380 = vmatprep.subr.mxu1 %v1220_v13 }
 0x150   : > { %2381 = vmatpush3.msra.mxu1 %v1220_v13 }
 0x151   : > { %2383 = vmatmul.mubr.msk.f32.vlgmr.msra.gmra.mxu1 %vm1228_vm7, %v2192_v18  ;;  %v1503_v18 = vld [vmem:[%s2902_s8 + $0x18] sm:$0xff] }
 0x152   : > { %2402 = vmatprep.mubr.msk.f32.mxu1 %vm1535_vm8, %v1500_v20  ;;  %v1504_v20 = vld [vmem:[%s2902_s8 + $0x20] sm:$0xff] }
 0x1f6   : > { %v1138_v21 = vpop.f32.mrf.mxu1  ;;  %v1065_v22 = vpop.f32.mrf.mxu0 }
 0x1f7   : > { %2183 = vst [vmem:[%s2785_s27 + $0x4] sm:$0x7] %v1138_v21  ;;  %1215 = vst [vmem:[%s2785_s27] sm:$0x7] %v1065_v22  ;;  %v1515_v33 = vrot.slane %v1138_v21, %v1508_v29  ;;  %v1487_v36 = vrot.slane %v1138_v21, %v1480_v31  ;;  %v1509_v37 = vrot.slane %v1065_v22, %v1508_v29 }
 0x1f8   : > { %v2334_v23 = vpop.f32.mrf.mxu1  ;;  %v2329_v24 = vpop.f32.mrf.mxu0  ;;  %v1481_v40 = vrot.slane %v1065_v22, %v1480_v31  ;;  %v1765_v48 = vrot.slane %v1065_v22, %v1764_v35  ;;  %v1771_v50 = vrot.slane %v1138_v21, %v1764_v35  ;;  %v2200_v21 = vld [vmem:[%s2902_s8 + $0x58] sm:$0xff]  ;;  %v1505_v22 = vld [vmem:[%s2902_s8 + $0x28] sm:$0xff] }
 0x1f9   : > { %v2213_v23 = vld [vmem:[%s2902_s8 + $0x60] sm:$0xff]  ;;  %v2214_v24 = vld [vmem:[%s2902_s8 + $0x68] sm:$0xff] }
 0x1fb   : > { %v1211_v25 = vpop.f32.mrf.mxu0 }
 0x1fc   : > { %2184 = vst [vmem:[%s2785_s27 + $0x8] sm:$0x7] %v1211_v25  ;;  %v1495_v45 = vrot.slane %v1211_v25, %v1480_v31  ;;  %v1523_v46 = vrot.slane %v1211_v25, %v1508_v29  ;;  %v1779_v59 = vrot.slane %v1211_v25, %v1764_v35  ;;  %v2215_v25 = vld [vmem:[%s2902_s8 + $0x70] sm:$0xff] }
 0x1fd   : > { %v2339_v26 = vpop.f32.mrf.mxu0 }
 0x1fe   : > { %v2216_v26 = vld [vmem:[%s2902_s8 + $0x78] sm:$0xff] }
 0x204   : > { %v2354_v32 = vpop.f32.mrf.mxu1 }
 0x205   : > { %v1511_v43 = vmul.f32 %v2354_v32, %v1509_v37  ;;  %v1483_v47 = vmul.f32 %v2354_v32, %v1481_v40  ;;  %v1767_v1 = vmul.f32 %v2354_v32, %v1765_v48 }
 0x206   : > { %v1301_v38 = vpop.f32.mrf.mxu1 }
 0x207   : > { %v1482_v49 = vmul.f32 %v1481_v40, %v1301_v38  ;;  %v1510_v52 = vmul.f32 %v1509_v37, %v1301_v38  ;;  %v1766_v7 = vmul.f32 %v1765_v48, %v1301_v38 }
 0x208   : > { %v2369_v30 = vpop.f32.mrf.mxu0 }
 0x209   : > { %v1517_v39 = vmul.f32 %v2369_v30, %v1515_v33  ;;  %v1489_v41 = vmul.f32 %v2369_v30, %v1487_v36  ;;  %v1773_v57 = vmul.f32 %v2369_v30, %v1771_v50 }
 0x20a   : > { %v1385_v34 = vpop.f32.mrf.mxu0 }
 0x20b   : > { %v1488_v42 = vmul.f32 %v1487_v36, %v1385_v34  ;;  %v1516_v44 = vmul.f32 %v1515_v33, %v1385_v34  ;;  %v1519_v53 = vadd.f32 %v1517_v39, %v1511_v43  ;;  %v1491_v56 = vadd.f32 %v1489_v41, %v1483_v47 }
 0x20c   : > { %v1772_v2 = vmul.f32 %v1771_v50, %v1385_v34  ;;  %v1775_v8 = vadd.f32 %v1773_v57, %v1767_v1 }
 0x20d   : > { %v1490_v58 = vadd.f32 %v1488_v42, %v1482_v49  ;;  %v1518_v61 = vadd.f32 %v1516_v44, %v1510_v52 }
 0x20e   : > { %v1774_v13 = vadd.f32 %v1772_v2, %v1766_v7 }
 0x211   : > { %v2384_v51 = vpop.f32.mrf.mxu1 }
 0x212   : > { %v1497_v54 = vmul.f32 %v2384_v51, %v1495_v45  ;;  %v1525_v55 = vmul.f32 %v2384_v51, %v1523_v46  ;;  %v1781_v3 = vmul.f32 %v2384_v51, %v1779_v59 }
 0x213   : > { %v1469_v60 = vpop.f32.mrf.mxu1 }
 0x214   : > { %v1496_v62 = vmul.f32 %v1495_v45, %v1469_v60  ;;  %v1524_v63 = vmul.f32 %v1523_v46, %v1469_v60  ;;  %v1527_v0 = vadd.f32 %v1525_v55, %v1519_v53  ;;  %v1499_v4 = vadd.f32 %v1497_v54, %v1491_v56 }
 0x215   : > { %v1780_v10 = vmul.f32 %v1779_v59, %v1469_v60  ;;  %v1783_v9 = vadd.f32 %v1781_v3, %v1775_v8 }
 0x216   : > { %2385 = vmatprep.subr.mxu0 %v1527_v0  ;;  %v1526_v5 = vadd.f32 %v1524_v63, %v1518_v61  ;;  %v1498_v6 = vadd.f32 %v1496_v62, %v1490_v58  ;;  %2398 = vmatprep.subr.mxu1 %v1499_v4 }
 0x217   : > { %2386 = vmatpush3.msra.mxu0 %v1527_v0  ;;  %2399 = vmatpush3.msra.mxu1 %v1499_v4  ;;  %v1782_v16 = vadd.f32 %v1780_v10, %v1774_v13 }
 0x218   : > { %2387 = vmatprep.subr.mxu0 %v1526_v5  ;;  %2400 = vmatprep.subr.mxu1 %v1498_v6 }
 0x219   : > { %2388 = vmatpush3.msra.mxu0 %v1526_v5  ;;  %2401 = vmatpush3.msra.mxu1 %v1498_v6 }
 0x21a   : > { %2390 = vmatmul.mubr.msk.f32.vlgmr.msra.gmra.mxu0 %vm1535_vm8, %v2196_v11  ;;  %2403 = vmatmul.mubr.msk.f32.vlgmr.msra.gmra.mxu1 %vm1535_vm8, %v1501_v12 }
 0x21b   : > { %2411 = vmatprep.subr.mxu0 %v1783_v9  ;;  %2392 = vmatprep.mubr.msk.f32.mxu0 %vm1535_vm8, %v2197_v14 }
 0x21c   : > { %2412 = vmatpush3.msra.mxu0 %v1783_v9  ;;  %2405 = vmatprep.mubr.msk.f32.mxu1 %vm1535_vm8, %v1502_v15 }
 0x21d   : > { %2413 = vmatprep.subr.mxu0 %v1782_v16 }
 0x21e   : > { %2414 = vmatpush3.msra.mxu0 %v1782_v16  ;;  %2406 = vmatmul.mubr.msk.f32.gmra.mxu1 %vm1535_vm8, %v1503_v18 }
 0x21f   : > { %2393 = vmatmul.mubr.msk.f32.gmra.mxu0 %vm1535_vm8, %v2198_v17  ;;  %2408 = vmatprep.mubr.msk.f32.mxu1 %vm1535_vm8, %v1504_v20 }
 0x220   : > { %2395 = vmatprep.mubr.msk.f32.mxu0 %vm1535_vm8, %v2199_v19 }
 0x222   : > { %2409 = vmatmul.mubr.msk.f32.gmra.mxu1 %vm1535_vm8, %v1505_v22 }
 0x223   : > { %2396 = vmatmul.mubr.msk.f32.gmra.mxu0 %vm1535_vm8, %v2200_v21 }
 0x224   : > { %2415 = vmatprep.mubr.msk.f32.mxu0 %vm1535_vm8, %v2213_v23 }
 0x227   : > { %2416 = vmatmul.mubr.msk.f32.vlgmr.msra.gmra.mxu0 %vm1535_vm8, %v2214_v24 }
 0x228   : > { %2418 = vmatprep.mubr.msk.f32.mxu0 %vm1535_vm8, %v2215_v25 }
 0x22b   : > { %2419 = vmatmul.mubr.msk.f32.gmra.mxu0 %vm1535_vm8, %v2216_v26 }
 0x22c   : > { %2421 = vmatprep.mubr.msk.f32.mxu0 %vm1535_vm8, %v2217_v27 }
 0x22f   : > { %2422 = vmatmul.mubr.msk.f32.gmra.mxu0 %vm1535_vm8, %v2218_v28 }
 0x2da   : > { %v2391_v29 = vpop.f32.mrf.mxu0  ;;  %v2404_v30 = vpop.f32.mrf.mxu1 }
 0x2db   : > { %v1739_v39 = vadd.f32 %v2404_v30, %v2391_v29 }
 0x2dc   : > { %v1620_v31 = vpop.f32.mrf.mxu0  ;;  %v1733_v32 = vpop.f32.mrf.mxu1 }
 0x2dd   : > { %v1734_v41 = vadd.f32 %v1733_v32, %v1620_v31 }
 0x2de   : > { %v2407_v34 = vpop.f32.mrf.mxu1 }
 0x2df   : > { %v2394_v33 = vpop.f32.mrf.mxu0 }
 0x2e0   : > { %v1743_v37 = vpop.f32.mrf.mxu1  ;;  %v1749_v45 = vadd.f32 %v2407_v34, %v2394_v33 }
 0x2e1   : > { %v1630_v35 = vpop.f32.mrf.mxu0 }
 0x2e2   : > { %v2410_v43 = vpop.f32.mrf.mxu1  ;;  %v1744_v48 = vadd.f32 %v1743_v37, %v1630_v35 }
 0x2e3   : > { %v2397_v36 = vpop.f32.mrf.mxu0 }
 0x2e4   : > { %v1753_v50 = vpop.f32.mrf.mxu1  ;;  %v1759_v52 = vadd.f32 %v2410_v43, %v2397_v36 }
 0x2e5   : > { %v1640_v38 = vpop.f32.mrf.mxu0 }
 0x2e6   : > { %v1754_v55 = vadd.f32 %v1753_v50, %v1640_v38 }
 0x2e7   : > { %v2417_v40 = vpop.f32.mrf.mxu0 }
 0x2e8   : > { %v1905_v42 = vadd.f32 %v2417_v40, %v1739_v39 }
 0x2e9   : > { %v1875_v44 = vpop.f32.mrf.mxu0 }
 0x2ea   : > { %1911 = vst [vmem:[%s496_s21 + $0x8] sm:$0xff] %v1905_v42  ;;  %v1904_v46 = vadd.f32 %v1875_v44, %v1734_v41 }
 0x2eb   : > { %v2420_v47 = vpop.f32.mrf.mxu0 }
 0x2ec   : > { %1910 = vst [vmem:[%s496_s21] sm:$0xff] %v1904_v46  ;;  %v1907_v49 = vadd.f32 %v2420_v47, %v1749_v45 }
 0x2ed   : > { %v1885_v51 = vpop.f32.mrf.mxu0 }
 0x2ee   : > { %1913 = vst [vmem:[%s496_s21 + $0x18] sm:$0xff] %v1907_v49  ;;  %v1906_v53 = vadd.f32 %v1885_v51, %v1744_v48 }
 0x2ef   : > { %v2423_v54 = vpop.f32.mrf.mxu0 }
 0x2f0   : > { %1912 = vst [vmem:[%s496_s21 + $0x10] sm:$0xff] %v1906_v53  ;;  %v1909_v56 = vadd.f32 %v2423_v54, %v1759_v52  ;;  %1926 = sbr.rel (!%p2665_p6) target bundleno = 765 (0x2fd), region = 136 }
 0x2f1   : > { %v1895_v57 = vpop.f32.mrf.mxu0  ;;  %v1971_v60 = vld [vmem:[%s496_s21 + $0x8] sm:$0xff] (%p2665_p6) }
 0x2f2   : > { %1915 = vst [vmem:[%s496_s21 + $0x28] sm:$0xff] %v1909_v56  ;;  %v1908_v58 = vadd.f32 %v1895_v57, %v1754_v55  ;;  %1972 = vst [vmem:[%s1930_s28 + $0x10] sm:$0xff] (%p2665_p6), %v1971_v60 }
 0x2f3   : > { %v1969_v59 = vld [vmem:[%s496_s21] sm:$0xff] (%p2665_p6) }
 0x2f4   : > { %1914 = vst [vmem:[%s496_s21 + $0x20] sm:$0xff] %v1908_v58  ;;  %1970 = vst [vmem:[%s1930_s28] sm:$0xff] (%p2665_p6), %v1969_v59 }
 0x2f5   : > { %v1975_v62 = vld [vmem:[%s496_s21 + $0x18] sm:$0xff] }
 0x2f6   : > { %1976 = vst [vmem:[%s1930_s28 + $0x30] sm:$0xff] %v1975_v62 }
 0x2f7   : > { %v1973_v61 = vld [vmem:[%s496_s21 + $0x10] sm:$0xff] }
 0x2f8   : > { %1974 = vst [vmem:[%s1930_s28 + $0x20] sm:$0xff] %v1973_v61 }
 0x2f9   : > { %v1979_v0 = vld [vmem:[%s496_s21 + $0x28] sm:$0xff] }
 0x2fa   : > { %1980 = vst [vmem:[%s1930_s28 + $0x50] sm:$0xff] %v1979_v0 }
 0x2fb   : > { %v1977_v63 = vld [vmem:[%s496_s21 + $0x20] sm:$0xff] }
 0x2fc   : > { %1978 = vst [vmem:[%s1930_s28 + $0x40] sm:$0xff] %v1977_v63 }
 0x2fd PF: > { %1986 = sbr.rel (!%p2665_p6) target bundleno = 773 (0x305), region = 174  ;;  %v2007_v1 = vld [vmem:[%s2785_s27] sm:$0xf] (%p2665_p6)  ;;  %v2009_v2 = vld [vmem:[%s2785_s27 + $0x4] sm:$0xf] (%p2665_p6) }
 0x2fe   : > { %s2432_s30 = smul.u32 (%p2665_p6), 6, %s2541_s16  ;;  %v2011_v3 = vld [vmem:[%s2785_s27 + $0x8] sm:$0xf] (%p2665_p6) }
 0x300   : > { %s1988_s13 = sadd.s32 (%p2665_p6), %s2537_s15, %s2432_s30 }
 0x301   : > { %s2226_s11 = sshll.u32 (%p2665_p6), %s1988_s13, 2 }
 0x302   : > { %s1990_s24 = scalar_lea.vmem %s2904_s10, %s2226_s11 }
 0x303   : > { %2008 = vst [vmem:[%s1990_s24] sm:$0xf] %v2007_v1  ;;  %2010 = vst [vmem:[%s1990_s24 + $0x8] sm:$0xf] %v2009_v2 }
 0x304   : > { %2012 = vst [vmem:[%s1990_s24 + $0x10] sm:$0xf] %v2011_v3 }
 0x305 PF: > { %s21_s19 = sadd.s32 1, %s2553_s19   ;;  %s2911_s25 = sld [smem:[#allocation6_spill]] }
 0x306   : > { %p18_p12 = scmp.ge.s32.totalorder %s21_s19, 6   ;;  %s2912_s12 = sld [smem:[#allocation7_spill]] }
 0x307   : > { %s2913_s13 = smov %s2533_s14  ;;  %s2914_s14 = smov %s2673_s29 }
 0x308   : > { %s2915_s15 = smov %s2545_s17  ;;  %s2916_s16 = smov %s2549_s18 }
 0x309   :  { %20 = sbr.rel (!%p18_p12) target bundleno = 4 (0x4), region = 274 }
 0x30b   : > { %s2917_s17 = smov %s2911_s25 }
 0x30c   : > { %s2918_s18 = smov %s2912_s12 }

</bundles_post_ra>
